<compile_context>
chip_gen: v7x
topology: tpu7x:2x2x1
jax: 0.10.0
libtpu: 0.0.40
codegen_flags: <defaults>
</compile_context>

<pallas_src>
from dataclasses import dataclass

import numpy as np
import jax
import jax.numpy as jnp
from jax import lax
from jax.experimental import pallas as pl
from jax.experimental.pallas import tpu as pltpu

LANE = 128             # TPU lane width (last dim of every block)
SUB_GROUP = 8          # sublanes per inner compute group -> one (8,128) f32 vreg
MIN_BLOCK_LANES = 2048 # minimum lanes per pipelined grid step
TARGET_LANES = 8192    # cap: double-buffered block fits v5e/v7x VMEM at sh_degree<=4


@dataclass
class GaussianAdapterCfg:
    gaussian_scale_min: float
    gaussian_scale_max: float
    sh_degree: int


def _sh_mask(sh_degree: int) -> np.ndarray:
    d_sh = (sh_degree + 1) ** 2
    mask = np.ones((d_sh,), np.float32)
    for degree in range(1, sh_degree + 1):
        mask[degree ** 2:(degree + 1) ** 2] = 0.1 * 0.25 ** degree
    return mask


def _round_up(x: int, m: int) -> int:
    return ((x + m - 1) // m) * m


def _make_kernel(sh_degree, scale_min, scale_max, image_shape, eps, sub_block):
    d_sh = (sh_degree + 1) ** 2
    d_in = 7 + 3 * d_sh
    f_in = 3 + d_in                    # rows: [x, y, depth, raw(d_in)]
    f_out = 16 + 3 * d_sh              # rows: [means 3 | cov6 6 | sh 3*d_sh | scales 3 | quat 4]
    h, w = image_shape
    px, py = 1.0 / float(w), 1.0 / float(h)      # pixel_size = 1 / (w, h)
    smin, smax = float(scale_min), float(scale_max)
    sh_mask3 = [float(v) for v in np.tile(_sh_mask(sh_degree), 3)]
    n_groups = sub_block // SUB_GROUP

    R_MEAN, R_COV, R_SH = 0, 3, 9
    R_SCALE = 9 + 3 * d_sh
    R_QUAT = R_SCALE + 3

    def kernel(ext_s, int_s, in_ref, out_ref):
        # ---- per-view camera scalars from SMEM (computed once per block) ----
        v = pl.program_id(0)
        E = [ext_s[v * 16 + i] for i in range(12)]          # top 3 rows of c2w
        K = [int_s[v * 9 + i] for i in range(9)]
        Rc = [[E[4 * a + b] for b in range(3)] for a in range(3)]
        origin = (E[3], E[7], E[11])

        # scale multiplier: 0.1 * sum(inv(K[:2, :2]) @ pixel_size)
        det2 = K[0] * K[4] - K[1] * K[3]
        mult = 0.1 * ((K[4] * px - K[1] * py) + (-K[3] * px + K[0] * py)) / det2

        # full 3x3 K inverse (scalar work, once per block)
        det = (K[0] * (K[4] * K[8] - K[5] * K[7])
               - K[1] * (K[3] * K[8] - K[5] * K[6])
               + K[2] * (K[3] * K[7] - K[4] * K[6]))
        inv_det = 1.0 / det
        kinv = [
            [(K[4] * K[8] - K[5] * K[7]) * inv_det,
             (K[2] * K[7] - K[1] * K[8]) * inv_det,
             (K[1] * K[5] - K[2] * K[4]) * inv_det],
            [(K[5] * K[6] - K[3] * K[8]) * inv_det,
             (K[0] * K[8] - K[2] * K[6]) * inv_det,
             (K[2] * K[3] - K[0] * K[5]) * inv_det],
            [(K[3] * K[7] - K[4] * K[6]) * inv_det,
             (K[1] * K[6] - K[0] * K[7]) * inv_det,
             (K[0] * K[4] - K[1] * K[3]) * inv_det],
        ]

        # Hoisted scalar->vector broadcasts (JAX does not CSE broadcast_in_dim;
        # materialize once, shared by every group iteration via closure).
        gshape = (SUB_GROUP, LANE)

        def bc(sv):
            return jnp.full(gshape, sv, jnp.float32)

        Rc_v = [[bc(Rc[a][b]) for b in range(3)] for a in range(3)]
        kinv_v = [[bc(kinv[a][b]) for b in range(3)] for a in range(3)]
        origin_v = [bc(origin[a]) for a in range(3)]
        mult_v = bc(mult)

        def group_body(g):
            if isinstance(g, int):
                lo = g * SUB_GROUP
            else:
                lo = pl.multiple_of(g * SUB_GROUP, SUB_GROUP)
            sl = pl.ds(lo, SUB_GROUP)

            x = in_ref[0, sl, :]
            y = in_ref[1, sl, :]
            depth = in_ref[2, sl, :]

            # --- scales: sigmoid squash * depth * pixel-footprint multiplier
            dmult = depth * mult_v
            s = []
            for c in range(3):
                sc = (smin + (smax - smin) * jax.nn.sigmoid(in_ref[3 + c, sl, :])) * dmult
                out_ref[R_SCALE + c, sl, :] = sc
                s.append(sc)

            # --- quaternion (xyzw) normalization ---
            q_raw = [in_ref[6 + c, sl, :] for c in range(4)]
            qn = jnp.sqrt(q_raw[0] * q_raw[0] + q_raw[1] * q_raw[1]
                          + q_raw[2] * q_raw[2] + q_raw[3] * q_raw[3])
            inv_qn = pl.reciprocal(qn + eps)
            qi, qj, qk, qr = [qc * inv_qn for qc in q_raw]
            out_ref[R_QUAT + 0, sl, :] = qi
            out_ref[R_QUAT + 1, sl, :] = qj
            out_ref[R_QUAT + 2, sl, :] = qk
            out_ref[R_QUAT + 3, sl, :] = qr

            # --- quaternion -> rotation matrix ---
            two_s = 2.0 * pl.reciprocal(qi * qi + qj * qj + qk * qk + qr * qr + eps)
            R = [[1.0 - two_s * (qj * qj + qk * qk),
                  two_s * (qi * qj - qk * qr),
                  two_s * (qi * qk + qj * qr)],
                 [two_s * (qi * qj + qk * qr),
                  1.0 - two_s * (qi * qi + qk * qk),
                  two_s * (qj * qk - qi * qr)],
                 [two_s * (qi * qk - qj * qr),
                  two_s * (qj * qk + qi * qr),
                  1.0 - two_s * (qi * qi + qj * qj)]]

            # --- world covariance, factored & symmetric:
            # cov = Rc R S S^T R^T Rc^T = N N^T,  N = Rc @ (R diag(scales))
            M = [[R[a][0] * s[0], R[a][1] * s[1], R[a][2] * s[2]] for a in range(3)]
            N = [[Rc_v[a][0] * M[0][b] + Rc_v[a][1] * M[1][b] + Rc_v[a][2] * M[2][b]
                  for b in range(3)] for a in range(3)]
            idx6 = 0
            for a in range(3):
                for b in range(a, 3):                       # 00,01,02,11,12,22
                    out_ref[R_COV + idx6, sl, :] = (
                        N[a][0] * N[b][0] + N[a][1] * N[b][1] + N[a][2] * N[b][2])
                    idx6 += 1

            # --- pinhole ray: mean = origin + Rc @ normalize(K^-1 [x,y,1]) * depth
            dcam = [kinv_v[a][0] * x + kinv_v[a][1] * y + kinv_v[a][2] for a in range(3)]
            inv_dn = lax.rsqrt(dcam[0] * dcam[0] + dcam[1] * dcam[1] + dcam[2] * dcam[2])
            dscale = inv_dn * depth
            for a in range(3):
                out_ref[R_MEAN + a, sl, :] = origin_v[a] + (
                    Rc_v[a][0] * dcam[0] + Rc_v[a][1] * dcam[1]
                    + Rc_v[a][2] * dcam[2]) * dscale

            # --- spherical harmonics masking (mask is identity for degree 0)
            # TODO(synk): rotate_sh (Wigner-D rotation of SH coefficients) for
            # sh_degree >= 1 is not implemented; identity is exact for degree 0.
            for r in range(3 * d_sh):
                val = in_ref[10 + r, sl, :]
                m = sh_mask3[r]
                out_ref[R_SH + r, sl, :] = val if m == 1.0 else val * m

        if n_groups == 1:
            group_body(0)
        else:
            def loop_body(g, carry):
                group_body(g)
                return carry
            lax.fori_loop(0, n_groups, loop_body, 0)

    return kernel, f_in, f_out


def _cam_table(x, mat_dims, cam_batch, batch):
    """Collapse camera params to (prod(cam_batch),) + mat_dims (constant per view)."""
    mat_dims = tuple(mat_dims)
    xb = x.shape[:-len(mat_dims)]
    if len(xb) >= len(batch):
        assert xb[-1] == 1, (
            "camera parameters must not vary along the innermost (per-ray) batch axis")
        x = x.reshape(xb[:-1] + mat_dims)
    x = jnp.broadcast_to(x, tuple(cam_batch) + mat_dims)
    return x.reshape((-1,) + mat_dims)


def gaussian_adapter_forward(cfg: GaussianAdapterCfg, extrinsics, intrinsics,
                             coordinates, depths, opacities, raw_gaussians,
                             image_shape, omnidirectional="none", eps=1e-8):
    # TODO(synk): omnidirectional ('omni'/'yin'/'yang'/'yang90') ray &
    # multiplier paths are not implemented; pinhole path only.
    assert omnidirectional not in ("omni", "yin", "yang", "yang90")

    d_sh = (cfg.sh_degree + 1) ** 2
    d_in = 7 + 3 * d_sh
    assert raw_gaussians.shape[-1] == d_in

    batch = jnp.broadcast_shapes(
        extrinsics.shape[:-2], intrinsics.shape[:-2], coordinates.shape[:-1],
        depths.shape, opacities.shape, raw_gaussians.shape[:-1])
    assert len(batch) >= 1
    cam_batch, n = batch[:-1], int(batch[-1])
    bv = int(np.prod(cam_batch)) if len(cam_batch) else 1

    f32 = jnp.float32
    ext_t = _cam_table(extrinsics.astype(f32), (4, 4), cam_batch, batch).reshape(bv * 16)
    int_t = _cam_table(intrinsics.astype(f32), (3, 3), cam_batch, batch).reshape(bv * 9)

    # One packed, feature-major per-gaussian input slab: rows = [x, y, depth, raw...]
    # TODO(synk): this feature-major packing costs one extra HBM pass; fuse it into
    # the producing network / keep the packed (f, G) layout downstream to remove it.
    f_in = 3 + d_in
    coord_b = jnp.broadcast_to(coordinates, batch + (2,)).astype(f32)
    depth_b = jnp.broadcast_to(depths, batch).astype(f32)[..., None]
    raw_b = jnp.broadcast_to(raw_gaussians, batch + (d_in,)).astype(f32)
    packed = jnp.concatenate([coord_b, depth_b, raw_b], axis=-1).reshape(bv, n, f_in)

    # Block selection: >= MIN_BLOCK_LANES lanes per grid step, capped at TARGET_LANES
    # (VMEM headroom on v5e/v7x); split blocks while the grid is too small to
    # overlap DMA with compute / feed both v7x TensorCores.
    block_lanes = min(TARGET_LANES, _round_up(n, MIN_BLOCK_LANES))
    npad = _round_up(n, block_lanes)
    while bv * (npad // block_lanes) < 8 and block_lanes % 2048 == 0:
        block_lanes //= 2                       # stays a multiple of 1024, divides npad
    tiles_per_view = npad // block_lanes
    sub_block = block_lanes // LANE             # sublane groups per block (multiple of 8)

    if npad > n:
        packed = jnp.pad(packed, ((0, 0), (0, npad - n), (0, 0)), mode="edge")
    packed = packed.reshape(bv * npad, f_in).T.reshape(f_in, (bv * npad) // LANE, LANE)

    kernel, f_in_k, f_out = _make_kernel(
        cfg.sh_degree, cfg.gaussian_scale_min, cfg.gaussian_scale_max,
        image_shape, eps, sub_block)
    assert f_in_k == f_in

    def idx(v, t, ext_ref, int_ref):            # scalar-prefetch refs are positional
        return (0, v * tiles_per_view + t, 0)

    out = pl.pallas_call(
        kernel,
        grid_spec=pltpu.PrefetchScalarGridSpec(
            num_scalar_prefetch=2,
            grid=(bv, tiles_per_view),
            in_specs=[pl.BlockSpec((f_in, sub_block, LANE), idx)],
            out_specs=pl.BlockSpec((f_out, sub_block, LANE), idx)),
        out_shape=jax.ShapeDtypeStruct((f_out, (bv * npad) // LANE, LANE), f32),
        compiler_params=pltpu.CompilerParams(
            dimension_semantics=("parallel", "parallel")),
    )(ext_t, int_t, packed)

    # Single transpose back, slice off lane padding, split packed fields.
    out = out.reshape(f_out, bv * npad).T.reshape(bv, npad, f_out)[:, :n]
    out = out.reshape(batch + (f_out,))
    means = out[..., 0:3]
    c = [out[..., 3 + i] for i in range(6)]                 # 00,01,02,11,12,22
    cov = jnp.stack([c[0], c[1], c[2],
                     c[1], c[3], c[4],
                     c[2], c[4], c[5]], axis=-1).reshape(batch + (3, 3))
    h0 = 9
    harm = out[..., h0:h0 + 3 * d_sh].reshape(batch + (3, d_sh))
    scales = out[..., h0 + 3 * d_sh:h0 + 3 * d_sh + 3]
    rot = out[..., h0 + 3 * d_sh + 3:h0 + 3 * d_sh + 7]
    return {
        "means": means,
        "covariances": cov,
        "harmonics": harm,
        "opacities": jnp.broadcast_to(opacities, batch).astype(f32),
        "scales": scales,
        "rotations": rot,
    }


def _reference(cfg, extrinsics, intrinsics, coordinates, depths, opacities,
               raw, image_shape, eps=1e-8):
    d_sh = (cfg.sh_degree + 1) ** 2
    batch = jnp.broadcast_shapes(
        extrinsics.shape[:-2], intrinsics.shape[:-2], coordinates.shape[:-1],
        depths.shape, opacities.shape, raw.shape[:-1])
    ext = jnp.broadcast_to(extrinsics, batch + (4, 4))
    K = jnp.broadcast_to(intrinsics, batch + (3, 3))
    xy = jnp.broadcast_to(coordinates, batch + (2,))
    d = jnp.broadcast_to(depths, batch)
    op = jnp.broadcast_to(opacities, batch)
    raw = jnp.broadcast_to(raw, batch + (raw.shape[-1],))

    s_raw, q_raw, sh_raw = raw[..., 0:3], raw[..., 3:7], raw[..., 7:]
    smin, smax = cfg.gaussian_scale_min, cfg.gaussian_scale_max
    scales = smin + (smax - smin) * jax.nn.sigmoid(s_raw)
    h, w = image_shape
    pix = jnp.array([1.0 / w, 1.0 / h], jnp.float32)
    mult = 0.1 * jnp.einsum("...ij,j->...i", jnp.linalg.inv(K[..., :2, :2]), pix).sum(-1)
    scales = scales * d[..., None] * mult[..., None]
    q = q_raw / (jnp.linalg.norm(q_raw, axis=-1, keepdims=True) + eps)
    sh = sh_raw.reshape(*batch, 3, d_sh) * jnp.asarray(_sh_mask(cfg.sh_degree))

    qi, qj, qk, qr = q[..., 0], q[..., 1], q[..., 2], q[..., 3]
    two_s = 2.0 / ((q * q).sum(-1) + eps)
    R = jnp.stack([
        1 - two_s * (qj * qj + qk * qk), two_s * (qi * qj - qk * qr), two_s * (qi * qk + qj * qr),
        two_s * (qi * qj + qk * qr), 1 - two_s * (qi * qi + qk * qk), two_s * (qj * qk - qi * qr),
        two_s * (qi * qk - qj * qr), two_s * (qj * qk + qi * qr), 1 - two_s * (qi * qi + qj * qj),
    ], axis=-1).reshape(*batch, 3, 3)
    S = scales[..., :, None] * jnp.eye(3, dtype=jnp.float32)
    cov = R @ S @ jnp.swapaxes(S, -1, -2) @ jnp.swapaxes(R, -1, -2)
    Rc = ext[..., :3, :3]
    cov = Rc @ cov @ jnp.swapaxes(Rc, -1, -2)

    hom = jnp.concatenate([xy, jnp.ones_like(xy[..., :1])], axis=-1)
    dcam = jnp.einsum("...ij,...j->...i", jnp.linalg.inv(K), hom)
    dcam = dcam / jnp.linalg.norm(dcam, axis=-1, keepdims=True)
    dworld = jnp.einsum("...ij,...j->...i", Rc, dcam)
    means = ext[..., :3, 3] + dworld * d[..., None]
    return {"means": means, "covariances": cov, "harmonics": sh,
            "opacities": op, "scales": scales, "rotations": q}


if __name__ == "__main__":
    cfg = GaussianAdapterCfg(gaussian_scale_min=0.5, gaussian_scale_max=15.0, sh_degree=0)
    B, V, H, W = 2, 2, 8, 8
    N = H * W
    d_sh = (cfg.sh_degree + 1) ** 2
    d_in = 7 + 3 * d_sh

    key = jax.random.PRNGKey(0)
    k1, k2, k3, k4, k5, k6, k7, k8 = jax.random.split(key, 8)

    # Camera-to-world extrinsics (orthonormal rotation + translation), broadcast over rays.
    rot_src = jax.random.normal(k1, (B, V, 3, 3), jnp.float32)
    Q, _ = jnp.linalg.qr(rot_src)
    t = jax.random.normal(k2, (B, V, 3), jnp.float32)
    ext = jnp.zeros((B, V, 4, 4), jnp.float32)
    ext = ext.at[..., :3, :3].set(Q).at[..., :3, 3].set(t).at[..., 3, 3].set(1.0)
    ext = ext[:, :, None]  # (B, V, 1, 4, 4)

    fx = 1.0 + 0.1 * jax.random.uniform(k3, (B, V), jnp.float32)
    fy = 1.0 + 0.1 * jax.random.uniform(k4, (B, V), jnp.float32)
    intr = jnp.zeros((B, V, 3, 3), jnp.float32)
    intr = (intr.at[..., 0, 0].set(fx).at[..., 1, 1].set(fy)
                .at[..., 0, 2].set(0.5).at[..., 1, 2].set(0.5).at[..., 2, 2].set(1.0))
    intr = intr[:, :, None]  # (B, V, 1, 3, 3)

    coords = jax.random.uniform(k5, (B, V, N, 2), jnp.float32)
    depths = 1.0 + 4.0 * jax.random.uniform(k6, (B, V, N), jnp.float32)
    opacities = jax.random.uniform(k7, (B, V, N), jnp.float32)
    raw_gaussians = jax.random.normal(k8, (B, V, N, d_in), jnp.float32)

    out = gaussian_adapter_forward(cfg, ext, intr, coords, depths, opacities,
                                   raw_gaussians, (H, W))
    out = jax.tree_util.tree_map(jax.block_until_ready, out)

    ref = _reference(cfg, ext, intr, coords, depths, opacities, raw_gaussians, (H, W))
    for name in ("means", "covariances", "harmonics", "opacities", "scales", "rotations"):
        np.testing.assert_allclose(np.asarray(out[name]), np.asarray(ref[name]),
                                   rtol=2e-4, atol=2e-4, err_msg=name)

    print("KERNEL_OK")
</pallas_src>

<mosaic_0001>
module attributes {stable_mosaic.version = 11 : i64} {
  func.func @kernel(%arg0: i32, %arg1: i32, %arg2: memref<64xf32, #tpu.memory_space<smem>>, %arg3: memref<36xf32, #tpu.memory_space<smem>>, %arg4: memref<13x8x128xf32, #tpu.memory_space<vmem>>, %arg5: memref<19x8x128xf32, #tpu.memory_space<vmem>>) attributes {dimension_semantics = [#tpu.dimension_semantics<parallel>, #tpu.dimension_semantics<parallel>], iteration_bounds = array<i64: 4, 2>, scalar_prefetch = 2 : i64, scratch_operands = 0 : i64, tpu.core_type = #tpu.core_type<tc>, window_params = [{transform_indices = @transform_0, window_bounds = array<i64: 13, 8, 128>}, {transform_indices = @transform_1, window_bounds = array<i64: 19, 8, 128>}]} {
    %c16_i32 = arith.constant 16 : i32
    %0 = arith.muli %arg0, %c16_i32 : i32
    %c0_i32 = arith.constant 0 : i32
    %1 = arith.addi %0, %c0_i32 : i32
    %2 = arith.index_cast %1 : i32 to index
    %3 = memref.load %arg2[%2] : memref<64xf32, #tpu.memory_space<smem>>
    %c16_i32_0 = arith.constant 16 : i32
    %4 = arith.muli %arg0, %c16_i32_0 : i32
    %c1_i32 = arith.constant 1 : i32
    %5 = arith.addi %4, %c1_i32 : i32
    %6 = arith.index_cast %5 : i32 to index
    %7 = memref.load %arg2[%6] : memref<64xf32, #tpu.memory_space<smem>>
    %c16_i32_1 = arith.constant 16 : i32
    %8 = arith.muli %arg0, %c16_i32_1 : i32
    %c2_i32 = arith.constant 2 : i32
    %9 = arith.addi %8, %c2_i32 : i32
    %10 = arith.index_cast %9 : i32 to index
    %11 = memref.load %arg2[%10] : memref<64xf32, #tpu.memory_space<smem>>
    %c16_i32_2 = arith.constant 16 : i32
    %12 = arith.muli %arg0, %c16_i32_2 : i32
    %c3_i32 = arith.constant 3 : i32
    %13 = arith.addi %12, %c3_i32 : i32
    %14 = arith.index_cast %13 : i32 to index
    %15 = memref.load %arg2[%14] : memref<64xf32, #tpu.memory_space<smem>>
    %c16_i32_3 = arith.constant 16 : i32
    %16 = arith.muli %arg0, %c16_i32_3 : i32
    %c4_i32 = arith.constant 4 : i32
    %17 = arith.addi %16, %c4_i32 : i32
    %18 = arith.index_cast %17 : i32 to index
    %19 = memref.load %arg2[%18] : memref<64xf32, #tpu.memory_space<smem>>
    %c16_i32_4 = arith.constant 16 : i32
    %20 = arith.muli %arg0, %c16_i32_4 : i32
    %c5_i32 = arith.constant 5 : i32
    %21 = arith.addi %20, %c5_i32 : i32
    %22 = arith.index_cast %21 : i32 to index
    %23 = memref.load %arg2[%22] : memref<64xf32, #tpu.memory_space<smem>>
    %c16_i32_5 = arith.constant 16 : i32
    %24 = arith.muli %arg0, %c16_i32_5 : i32
    %c6_i32 = arith.constant 6 : i32
    %25 = arith.addi %24, %c6_i32 : i32
    %26 = arith.index_cast %25 : i32 to index
    %27 = memref.load %arg2[%26] : memref<64xf32, #tpu.memory_space<smem>>
    %c16_i32_6 = arith.constant 16 : i32
    %28 = arith.muli %arg0, %c16_i32_6 : i32
    %c7_i32 = arith.constant 7 : i32
    %29 = arith.addi %28, %c7_i32 : i32
    %30 = arith.index_cast %29 : i32 to index
    %31 = memref.load %arg2[%30] : memref<64xf32, #tpu.memory_space<smem>>
    %c16_i32_7 = arith.constant 16 : i32
    %32 = arith.muli %arg0, %c16_i32_7 : i32
    %c8_i32 = arith.constant 8 : i32
    %33 = arith.addi %32, %c8_i32 : i32
    %34 = arith.index_cast %33 : i32 to index
    %35 = memref.load %arg2[%34] : memref<64xf32, #tpu.memory_space<smem>>
    %c16_i32_8 = arith.constant 16 : i32
    %36 = arith.muli %arg0, %c16_i32_8 : i32
    %c9_i32 = arith.constant 9 : i32
    %37 = arith.addi %36, %c9_i32 : i32
    %38 = arith.index_cast %37 : i32 to index
    %39 = memref.load %arg2[%38] : memref<64xf32, #tpu.memory_space<smem>>
    %c16_i32_9 = arith.constant 16 : i32
    %40 = arith.muli %arg0, %c16_i32_9 : i32
    %c10_i32 = arith.constant 10 : i32
    %41 = arith.addi %40, %c10_i32 : i32
    %42 = arith.index_cast %41 : i32 to index
    %43 = memref.load %arg2[%42] : memref<64xf32, #tpu.memory_space<smem>>
    %c16_i32_10 = arith.constant 16 : i32
    %44 = arith.muli %arg0, %c16_i32_10 : i32
    %c11_i32 = arith.constant 11 : i32
    %45 = arith.addi %44, %c11_i32 : i32
    %46 = arith.index_cast %45 : i32 to index
    %47 = memref.load %arg2[%46] : memref<64xf32, #tpu.memory_space<smem>>
    %c9_i32_11 = arith.constant 9 : i32
    %48 = arith.muli %arg0, %c9_i32_11 : i32
    %c0_i32_12 = arith.constant 0 : i32
    %49 = arith.addi %48, %c0_i32_12 : i32
    %50 = arith.index_cast %49 : i32 to index
    %51 = memref.load %arg3[%50] : memref<36xf32, #tpu.memory_space<smem>>
    %c9_i32_13 = arith.constant 9 : i32
    %52 = arith.muli %arg0, %c9_i32_13 : i32
    %c1_i32_14 = arith.constant 1 : i32
    %53 = arith.addi %52, %c1_i32_14 : i32
    %54 = arith.index_cast %53 : i32 to index
    %55 = memref.load %arg3[%54] : memref<36xf32, #tpu.memory_space<smem>>
    %c9_i32_15 = arith.constant 9 : i32
    %56 = arith.muli %arg0, %c9_i32_15 : i32
    %c2_i32_16 = arith.constant 2 : i32
    %57 = arith.addi %56, %c2_i32_16 : i32
    %58 = arith.index_cast %57 : i32 to index
    %59 = memref.load %arg3[%58] : memref<36xf32, #tpu.memory_space<smem>>
    %c9_i32_17 = arith.constant 9 : i32
    %60 = arith.muli %arg0, %c9_i32_17 : i32
    %c3_i32_18 = arith.constant 3 : i32
    %61 = arith.addi %60, %c3_i32_18 : i32
    %62 = arith.index_cast %61 : i32 to index
    %63 = memref.load %arg3[%62] : memref<36xf32, #tpu.memory_space<smem>>
    %c9_i32_19 = arith.constant 9 : i32
    %64 = arith.muli %arg0, %c9_i32_19 : i32
    %c4_i32_20 = arith.constant 4 : i32
    %65 = arith.addi %64, %c4_i32_20 : i32
    %66 = arith.index_cast %65 : i32 to index
    %67 = memref.load %arg3[%66] : memref<36xf32, #tpu.memory_space<smem>>
    %c9_i32_21 = arith.constant 9 : i32
    %68 = arith.muli %arg0, %c9_i32_21 : i32
    %c5_i32_22 = arith.constant 5 : i32
    %69 = arith.addi %68, %c5_i32_22 : i32
    %70 = arith.index_cast %69 : i32 to index
    %71 = memref.load %arg3[%70] : memref<36xf32, #tpu.memory_space<smem>>
    %c9_i32_23 = arith.constant 9 : i32
    %72 = arith.muli %arg0, %c9_i32_23 : i32
    %c6_i32_24 = arith.constant 6 : i32
    %73 = arith.addi %72, %c6_i32_24 : i32
    %74 = arith.index_cast %73 : i32 to index
    %75 = memref.load %arg3[%74] : memref<36xf32, #tpu.memory_space<smem>>
    %c9_i32_25 = arith.constant 9 : i32
    %76 = arith.muli %arg0, %c9_i32_25 : i32
    %c7_i32_26 = arith.constant 7 : i32
    %77 = arith.addi %76, %c7_i32_26 : i32
    %78 = arith.index_cast %77 : i32 to index
    %79 = memref.load %arg3[%78] : memref<36xf32, #tpu.memory_space<smem>>
    %c9_i32_27 = arith.constant 9 : i32
    %80 = arith.muli %arg0, %c9_i32_27 : i32
    %c8_i32_28 = arith.constant 8 : i32
    %81 = arith.addi %80, %c8_i32_28 : i32
    %82 = arith.index_cast %81 : i32 to index
    %83 = memref.load %arg3[%82] : memref<36xf32, #tpu.memory_space<smem>>
    %84 = arith.mulf %51, %67 : f32
    %85 = arith.mulf %55, %63 : f32
    %86 = arith.subf %84, %85 : f32
    %cst = arith.constant 1.250000e-01 : f32
    %87 = arith.mulf %67, %cst : f32
    %cst_29 = arith.constant 1.250000e-01 : f32
    %88 = arith.mulf %55, %cst_29 : f32
    %89 = arith.subf %87, %88 : f32
    %cst_30 = arith.constant 0.000000e+00 : f32
    %90 = arith.subf %cst_30, %63 : f32
    %cst_31 = arith.constant 1.250000e-01 : f32
    %91 = arith.mulf %90, %cst_31 : f32
    %cst_32 = arith.constant 1.250000e-01 : f32
    %92 = arith.mulf %51, %cst_32 : f32
    %93 = arith.addf %91, %92 : f32
    %94 = arith.addf %89, %93 : f32
    %cst_33 = arith.constant 1.000000e-01 : f32
    %95 = arith.mulf %cst_33, %94 : f32
    %96 = arith.divf %95, %86 : f32
    %97 = arith.mulf %67, %83 : f32
    %98 = arith.mulf %71, %79 : f32
    %99 = arith.subf %97, %98 : f32
    %100 = arith.mulf %51, %99 : f32
    %101 = arith.mulf %63, %83 : f32
    %102 = arith.mulf %71, %75 : f32
    %103 = arith.subf %101, %102 : f32
    %104 = arith.mulf %55, %103 : f32
    %105 = arith.subf %100, %104 : f32
    %106 = arith.mulf %63, %79 : f32
    %107 = arith.mulf %67, %75 : f32
    %108 = arith.subf %106, %107 : f32
    %109 = arith.mulf %59, %108 : f32
    %110 = arith.addf %105, %109 : f32
    %cst_34 = arith.constant 1.000000e+00 : f32
    %111 = arith.divf %cst_34, %110 : f32
    %112 = arith.mulf %67, %83 : f32
    %113 = arith.mulf %71, %79 : f32
    %114 = arith.subf %112, %113 : f32
    %115 = arith.mulf %114, %111 : f32
    %116 = arith.mulf %59, %79 : f32
    %117 = arith.mulf %55, %83 : f32
    %118 = arith.subf %116, %117 : f32
    %119 = arith.mulf %118, %111 : f32
    %120 = arith.mulf %55, %71 : f32
    %121 = arith.mulf %59, %67 : f32
    %122 = arith.subf %120, %121 : f32
    %123 = arith.mulf %122, %111 : f32
    %124 = arith.mulf %71, %75 : f32
    %125 = arith.mulf %63, %83 : f32
    %126 = arith.subf %124, %125 : f32
    %127 = arith.mulf %126, %111 : f32
    %128 = arith.mulf %51, %83 : f32
    %129 = arith.mulf %59, %75 : f32
    %130 = arith.subf %128, %129 : f32
    %131 = arith.mulf %130, %111 : f32
    %132 = arith.mulf %59, %63 : f32
    %133 = arith.mulf %51, %71 : f32
    %134 = arith.subf %132, %133 : f32
    %135 = arith.mulf %134, %111 : f32
    %136 = arith.mulf %63, %79 : f32
    %137 = arith.mulf %67, %75 : f32
    %138 = arith.subf %136, %137 : f32
    %139 = arith.mulf %138, %111 : f32
    %140 = arith.mulf %55, %75 : f32
    %141 = arith.mulf %51, %79 : f32
    %142 = arith.subf %140, %141 : f32
    %143 = arith.mulf %142, %111 : f32
    %144 = arith.mulf %51, %67 : f32
    %145 = arith.mulf %55, %63 : f32
    %146 = arith.subf %144, %145 : f32
    %147 = arith.mulf %146, %111 : f32
    %148 = vector.broadcast %3 : f32 to vector<8x128xf32>
    %149 = vector.broadcast %7 : f32 to vector<8x128xf32>
    %150 = vector.broadcast %11 : f32 to vector<8x128xf32>
    %151 = vector.broadcast %19 : f32 to vector<8x128xf32>
    %152 = vector.broadcast %23 : f32 to vector<8x128xf32>
    %153 = vector.broadcast %27 : f32 to vector<8x128xf32>
    %154 = vector.broadcast %35 : f32 to vector<8x128xf32>
    %155 = vector.broadcast %39 : f32 to vector<8x128xf32>
    %156 = vector.broadcast %43 : f32 to vector<8x128xf32>
    %157 = vector.broadcast %115 : f32 to vector<8x128xf32>
    %158 = vector.broadcast %119 : f32 to vector<8x128xf32>
    %159 = vector.broadcast %123 : f32 to vector<8x128xf32>
    %160 = vector.broadcast %127 : f32 to vector<8x128xf32>
    %161 = vector.broadcast %131 : f32 to vector<8x128xf32>
    %162 = vector.broadcast %135 : f32 to vector<8x128xf32>
    %163 = vector.broadcast %139 : f32 to vector<8x128xf32>
    %164 = vector.broadcast %143 : f32 to vector<8x128xf32>
    %165 = vector.broadcast %147 : f32 to vector<8x128xf32>
    %166 = vector.broadcast %15 : f32 to vector<8x128xf32>
    %167 = vector.broadcast %31 : f32 to vector<8x128xf32>
    %168 = vector.broadcast %47 : f32 to vector<8x128xf32>
    %169 = vector.broadcast %96 : f32 to vector<8x128xf32>
    %c0 = arith.constant 0 : index
    %c0_35 = arith.constant 0 : index
    %c0_36 = arith.constant 0 : index
    %170 = vector.load %arg4[%c0, %c0_35, %c0_36] : memref<13x8x128xf32, #tpu.memory_space<vmem>>, vector<1x8x128xf32>
    %171 = vector.shape_cast %170 : vector<1x8x128xf32> to vector<8x128xf32>
    %c1 = arith.constant 1 : index
    %c0_37 = arith.constant 0 : index
    %c0_38 = arith.constant 0 : index
    %172 = vector.load %arg4[%c1, %c0_37, %c0_38] : memref<13x8x128xf32, #tpu.memory_space<vmem>>, vector<1x8x128xf32>
    %173 = vector.shape_cast %172 : vector<1x8x128xf32> to vector<8x128xf32>
    %c2 = arith.constant 2 : index
    %c0_39 = arith.constant 0 : index
    %c0_40 = arith.constant 0 : index
    %174 = vector.load %arg4[%c2, %c0_39, %c0_40] : memref<13x8x128xf32, #tpu.memory_space<vmem>>, vector<1x8x128xf32>
    %175 = vector.shape_cast %174 : vector<1x8x128xf32> to vector<8x128xf32>
    %176 = arith.mulf %175, %169 : vector<8x128xf32>
    %c3 = arith.constant 3 : index
    %c0_41 = arith.constant 0 : index
    %c0_42 = arith.constant 0 : index
    %177 = vector.load %arg4[%c3, %c0_41, %c0_42] : memref<13x8x128xf32, #tpu.memory_space<vmem>>, vector<1x8x128xf32>
    %178 = vector.shape_cast %177 : vector<1x8x128xf32> to vector<8x128xf32>
    %179 = arith.negf %178 : vector<8x128xf32>
    %180 = math.exp %179 : vector<8x128xf32>
    %cst_43 = arith.constant 1.000000e+00 : f32
    %181 = vector.broadcast %cst_43 : f32 to vector<8x128xf32>
    %182 = arith.addf %181, %180 : vector<8x128xf32>
    %183 = arith.divf %181, %182 : vector<8x128xf32>
    %cst_44 = arith.constant 1.450000e+01 : f32
    %184 = vector.broadcast %cst_44 : f32 to vector<8x128xf32>
    %185 = arith.mulf %184, %183 : vector<8x128xf32>
    %cst_45 = arith.constant 5.000000e-01 : f32
    %186 = vector.broadcast %cst_45 : f32 to vector<8x128xf32>
    %187 = arith.addf %186, %185 : vector<8x128xf32>
    %188 = arith.mulf %187, %176 : vector<8x128xf32>
    %c12 = arith.constant 12 : index
    %c0_46 = arith.constant 0 : index
    %c0_47 = arith.constant 0 : index
    %189 = vector.load %arg5[%c12, %c0_46, %c0_47] : memref<19x8x128xf32, #tpu.memory_space<vmem>>, vector<1x8x128xf32>
    %190 = vector.shape_cast %189 : vector<1x8x128xf32> to vector<8x128xf32>
    %191 = vector.shape_cast %188 : vector<8x128xf32> to vector<1x8x128xf32>
    tpu.vector_store %arg5[%c12, %c0_46, %c0_47], %191 {strides = array<i32>} : memref<19x8x128xf32, #tpu.memory_space<vmem>>, vector<1x8x128xf32>,
    %c4 = arith.constant 4 : index
    %c0_48 = arith.constant 0 : index
    %c0_49 = arith.constant 0 : index
    %192 = vector.load %arg4[%c4, %c0_48, %c0_49] : memref<13x8x128xf32, #tpu.memory_space<vmem>>, vector<1x8x128xf32>
    %193 = vector.shape_cast %192 : vector<1x8x128xf32> to vector<8x128xf32>
    %194 = arith.negf %193 : vector<8x128xf32>
    %195 = math.exp %194 : vector<8x128xf32>
    %cst_50 = arith.constant 1.000000e+00 : f32
    %196 = vector.broadcast %cst_50 : f32 to vector<8x128xf32>
    %197 = arith.addf %196, %195 : vector<8x128xf32>
    %198 = arith.divf %196, %197 : vector<8x128xf32>
    %cst_51 = arith.constant 1.450000e+01 : f32
    %199 = vector.broadcast %cst_51 : f32 to vector<8x128xf32>
    %200 = arith.mulf %199, %198 : vector<8x128xf32>
    %cst_52 = arith.constant 5.000000e-01 : f32
    %201 = vector.broadcast %cst_52 : f32 to vector<8x128xf32>
    %202 = arith.addf %201, %200 : vector<8x128xf32>
    %203 = arith.mulf %202, %176 : vector<8x128xf32>
    %c13 = arith.constant 13 : index
    %c0_53 = arith.constant 0 : index
    %c0_54 = arith.constant 0 : index
    %204 = vector.load %arg5[%c13, %c0_53, %c0_54] : memref<19x8x128xf32, #tpu.memory_space<vmem>>, vector<1x8x128xf32>
    %205 = vector.shape_cast %204 : vector<1x8x128xf32> to vector<8x128xf32>
    %206 = vector.shape_cast %203 : vector<8x128xf32> to vector<1x8x128xf32>
    tpu.vector_store %arg5[%c13, %c0_53, %c0_54], %206 {strides = array<i32>} : memref<19x8x128xf32, #tpu.memory_space<vmem>>, vector<1x8x128xf32>,
    %c5 = arith.constant 5 : index
    %c0_55 = arith.constant 0 : index
    %c0_56 = arith.constant 0 : index
    %207 = vector.load %arg4[%c5, %c0_55, %c0_56] : memref<13x8x128xf32, #tpu.memory_space<vmem>>, vector<1x8x128xf32>
    %208 = vector.shape_cast %207 : vector<1x8x128xf32> to vector<8x128xf32>
    %209 = arith.negf %208 : vector<8x128xf32>
    %210 = math.exp %209 : vector<8x128xf32>
    %cst_57 = arith.constant 1.000000e+00 : f32
    %211 = vector.broadcast %cst_57 : f32 to vector<8x128xf32>
    %212 = arith.addf %211, %210 : vector<8x128xf32>
    %213 = arith.divf %211, %212 : vector<8x128xf32>
    %cst_58 = arith.constant 1.450000e+01 : f32
    %214 = vector.broadcast %cst_58 : f32 to vector<8x128xf32>
    %215 = arith.mulf %214, %213 : vector<8x128xf32>
    %cst_59 = arith.constant 5.000000e-01 : f32
    %216 = vector.broadcast %cst_59 : f32 to vector<8x128xf32>
    %217 = arith.addf %216, %215 : vector<8x128xf32>
    %218 = arith.mulf %217, %176 : vector<8x128xf32>
    %c14 = arith.constant 14 : index
    %c0_60 = arith.constant 0 : index
    %c0_61 = arith.constant 0 : index
    %219 = vector.load %arg5[%c14, %c0_60, %c0_61] : memref<19x8x128xf32, #tpu.memory_space<vmem>>, vector<1x8x128xf32>
    %220 = vector.shape_cast %219 : vector<1x8x128xf32> to vector<8x128xf32>
    %221 = vector.shape_cast %218 : vector<8x128xf32> to vector<1x8x128xf32>
    tpu.vector_store %arg5[%c14, %c0_60, %c0_61], %221 {strides = array<i32>} : memref<19x8x128xf32, #tpu.memory_space<vmem>>, vector<1x8x128xf32>,
    %c6 = arith.constant 6 : index
    %c0_62 = arith.constant 0 : index
    %c0_63 = arith.constant 0 : index
    %222 = vector.load %arg4[%c6, %c0_62, %c0_63] : memref<13x8x128xf32, #tpu.memory_space<vmem>>, vector<1x8x128xf32>
    %223 = vector.shape_cast %222 : vector<1x8x128xf32> to vector<8x128xf32>
    %c7 = arith.constant 7 : index
    %c0_64 = arith.constant 0 : index
    %c0_65 = arith.constant 0 : index
    %224 = vector.load %arg4[%c7, %c0_64, %c0_65] : memref<13x8x128xf32, #tpu.memory_space<vmem>>, vector<1x8x128xf32>
    %225 = vector.shape_cast %224 : vector<1x8x128xf32> to vector<8x128xf32>
    %c8 = arith.constant 8 : index
    %c0_66 = arith.constant 0 : index
    %c0_67 = arith.constant 0 : index
    %226 = vector.load %arg4[%c8, %c0_66, %c0_67] : memref<13x8x128xf32, #tpu.memory_space<vmem>>, vector<1x8x128xf32>
    %227 = vector.shape_cast %226 : vector<1x8x128xf32> to vector<8x128xf32>
    %c9 = arith.constant 9 : index
    %c0_68 = arith.constant 0 : index
    %c0_69 = arith.constant 0 : index
    %228 = vector.load %arg4[%c9, %c0_68, %c0_69] : memref<13x8x128xf32, #tpu.memory_space<vmem>>, vector<1x8x128xf32>
    %229 = vector.shape_cast %228 : vector<1x8x128xf32> to vector<8x128xf32>
    %230 = arith.mulf %223, %223 : vector<8x128xf32>
    %231 = arith.mulf %225, %225 : vector<8x128xf32>
    %232 = arith.addf %230, %231 : vector<8x128xf32>
    %233 = arith.mulf %227, %227 : vector<8x128xf32>
    %234 = arith.addf %232, %233 : vector<8x128xf32>
    %235 = arith.mulf %229, %229 : vector<8x128xf32>
    %236 = arith.addf %234, %235 : vector<8x128xf32>
    %237 = math.sqrt %236 : vector<8x128xf32>
    %cst_70 = arith.constant 9.99999993E-9 : f32
    %238 = vector.broadcast %cst_70 : f32 to vector<8x128xf32>
    %239 = arith.addf %237, %238 : vector<8x128xf32>
    %240 = tpu.reciprocal %239 : vector<8x128xf32> -> vector<8x128xf32>
    %241 = arith.mulf %223, %240 : vector<8x128xf32>
    %242 = arith.mulf %225, %240 : vector<8x128xf32>
    %243 = arith.mulf %227, %240 : vector<8x128xf32>
    %244 = arith.mulf %229, %240 : vector<8x128xf32>
    %c15 = arith.constant 15 : index
    %c0_71 = arith.constant 0 : index
    %c0_72 = arith.constant 0 : index
    %245 = vector.load %arg5[%c15, %c0_71, %c0_72] : memref<19x8x128xf32, #tpu.memory_space<vmem>>, vector<1x8x128xf32>
    %246 = vector.shape_cast %245 : vector<1x8x128xf32> to vector<8x128xf32>
    %247 = vector.shape_cast %241 : vector<8x128xf32> to vector<1x8x128xf32>
    tpu.vector_store %arg5[%c15, %c0_71, %c0_72], %247 {strides = array<i32>} : memref<19x8x128xf32, #tpu.memory_space<vmem>>, vector<1x8x128xf32>,
    %c16 = arith.constant 16 : index
    %c0_73 = arith.constant 0 : index
    %c0_74 = arith.constant 0 : index
    %248 = vector.load %arg5[%c16, %c0_73, %c0_74] : memref<19x8x128xf32, #tpu.memory_space<vmem>>, vector<1x8x128xf32>
    %249 = vector.shape_cast %248 : vector<1x8x128xf32> to vector<8x128xf32>
    %250 = vector.shape_cast %242 : vector<8x128xf32> to vector<1x8x128xf32>
    tpu.vector_store %arg5[%c16, %c0_73, %c0_74], %250 {strides = array<i32>} : memref<19x8x128xf32, #tpu.memory_space<vmem>>, vector<1x8x128xf32>,
    %c17 = arith.constant 17 : index
    %c0_75 = arith.constant 0 : index
    %c0_76 = arith.constant 0 : index
    %251 = vector.load %arg5[%c17, %c0_75, %c0_76] : memref<19x8x128xf32, #tpu.memory_space<vmem>>, vector<1x8x128xf32>
    %252 = vector.shape_cast %251 : vector<1x8x128xf32> to vector<8x128xf32>
    %253 = vector.shape_cast %243 : vector<8x128xf32> to vector<1x8x128xf32>
    tpu.vector_store %arg5[%c17, %c0_75, %c0_76], %253 {strides = array<i32>} : memref<19x8x128xf32, #tpu.memory_space<vmem>>, vector<1x8x128xf32>,
    %c18 = arith.constant 18 : index
    %c0_77 = arith.constant 0 : index
    %c0_78 = arith.constant 0 : index
    %254 = vector.load %arg5[%c18, %c0_77, %c0_78] : memref<19x8x128xf32, #tpu.memory_space<vmem>>, vector<1x8x128xf32>
    %255 = vector.shape_cast %254 : vector<1x8x128xf32> to vector<8x128xf32>
    %256 = vector.shape_cast %244 : vector<8x128xf32> to vector<1x8x128xf32>
    tpu.vector_store %arg5[%c18, %c0_77, %c0_78], %256 {strides = array<i32>} : memref<19x8x128xf32, #tpu.memory_space<vmem>>, vector<1x8x128xf32>,
    %257 = arith.mulf %241, %241 : vector<8x128xf32>
    %258 = arith.mulf %242, %242 : vector<8x128xf32>
    %259 = arith.addf %257, %258 : vector<8x128xf32>
    %260 = arith.mulf %243, %243 : vector<8x128xf32>
    %261 = arith.addf %259, %260 : vector<8x128xf32>
    %262 = arith.mulf %244, %244 : vector<8x128xf32>
    %263 = arith.addf %261, %262 : vector<8x128xf32>
    %cst_79 = arith.constant 9.99999993E-9 : f32
    %264 = vector.broadcast %cst_79 : f32 to vector<8x128xf32>
    %265 = arith.addf %263, %264 : vector<8x128xf32>
    %266 = tpu.reciprocal %265 : vector<8x128xf32> -> vector<8x128xf32>
    %cst_80 = arith.constant 2.000000e+00 : f32
    %267 = vector.broadcast %cst_80 : f32 to vector<8x128xf32>
    %268 = arith.mulf %267, %266 : vector<8x128xf32>
    %269 = arith.mulf %242, %242 : vector<8x128xf32>
    %270 = arith.mulf %243, %243 : vector<8x128xf32>
    %271 = arith.addf %269, %270 : vector<8x128xf32>
    %272 = arith.mulf %268, %271 : vector<8x128xf32>
    %cst_81 = arith.constant 1.000000e+00 : f32
    %273 = vector.broadcast %cst_81 : f32 to vector<8x128xf32>
    %274 = arith.subf %273, %272 : vector<8x128xf32>
    %275 = arith.mulf %241, %242 : vector<8x128xf32>
    %276 = arith.mulf %243, %244 : vector<8x128xf32>
    %277 = arith.subf %275, %276 : vector<8x128xf32>
    %278 = arith.mulf %268, %277 : vector<8x128xf32>
    %279 = arith.mulf %241, %243 : vector<8x128xf32>
    %280 = arith.mulf %242, %244 : vector<8x128xf32>
    %281 = arith.addf %279, %280 : vector<8x128xf32>
    %282 = arith.mulf %268, %281 : vector<8x128xf32>
    %283 = arith.mulf %241, %242 : vector<8x128xf32>
    %284 = arith.mulf %243, %244 : vector<8x128xf32>
    %285 = arith.addf %283, %284 : vector<8x128xf32>
    %286 = arith.mulf %268, %285 : vector<8x128xf32>
    %287 = arith.mulf %241, %241 : vector<8x128xf32>
    %288 = arith.mulf %243, %243 : vector<8x128xf32>
    %289 = arith.addf %287, %288 : vector<8x128xf32>
    %290 = arith.mulf %268, %289 : vector<8x128xf32>
    %cst_82 = arith.constant 1.000000e+00 : f32
    %291 = vector.broadcast %cst_82 : f32 to vector<8x128xf32>
    %292 = arith.subf %291, %290 : vector<8x128xf32>
    %293 = arith.mulf %242, %243 : vector<8x128xf32>
    %294 = arith.mulf %241, %244 : vector<8x128xf32>
    %295 = arith.subf %293, %294 : vector<8x128xf32>
    %296 = arith.mulf %268, %295 : vector<8x128xf32>
    %297 = arith.mulf %241, %243 : vector<8x128xf32>
    %298 = arith.mulf %242, %244 : vector<8x128xf32>
    %299 = arith.subf %297, %298 : vector<8x128xf32>
    %300 = arith.mulf %268, %299 : vector<8x128xf32>
    %301 = arith.mulf %242, %243 : vector<8x128xf32>
    %302 = arith.mulf %241, %244 : vector<8x128xf32>
    %303 = arith.addf %301, %302 : vector<8x128xf32>
    %304 = arith.mulf %268, %303 : vector<8x128xf32>
    %305 = arith.mulf %241, %241 : vector<8x128xf32>
    %306 = arith.mulf %242, %242 : vector<8x128xf32>
    %307 = arith.addf %305, %306 : vector<8x128xf32>
    %308 = arith.mulf %268, %307 : vector<8x128xf32>
    %cst_83 = arith.constant 1.000000e+00 : f32
    %309 = vector.broadcast %cst_83 : f32 to vector<8x128xf32>
    %310 = arith.subf %309, %308 : vector<8x128xf32>
    %311 = arith.mulf %274, %188 : vector<8x128xf32>
    %312 = arith.mulf %278, %203 : vector<8x128xf32>
    %313 = arith.mulf %282, %218 : vector<8x128xf32>
    %314 = arith.mulf %286, %188 : vector<8x128xf32>
    %315 = arith.mulf %292, %203 : vector<8x128xf32>
    %316 = arith.mulf %296, %218 : vector<8x128xf32>
    %317 = arith.mulf %300, %188 : vector<8x128xf32>
    %318 = arith.mulf %304, %203 : vector<8x128xf32>
    %319 = arith.mulf %310, %218 : vector<8x128xf32>
    %320 = arith.mulf %148, %311 : vector<8x128xf32>
    %321 = arith.mulf %149, %314 : vector<8x128xf32>
    %322 = arith.addf %320, %321 : vector<8x128xf32>
    %323 = arith.mulf %150, %317 : vector<8x128xf32>
    %324 = arith.addf %322, %323 : vector<8x128xf32>
    %325 = arith.mulf %148, %312 : vector<8x128xf32>
    %326 = arith.mulf %149, %315 : vector<8x128xf32>
    %327 = arith.addf %325, %326 : vector<8x128xf32>
    %328 = arith.mulf %150, %318 : vector<8x128xf32>
    %329 = arith.addf %327, %328 : vector<8x128xf32>
    %330 = arith.mulf %148, %313 : vector<8x128xf32>
    %331 = arith.mulf %149, %316 : vector<8x128xf32>
    %332 = arith.addf %330, %331 : vector<8x128xf32>
    %333 = arith.mulf %150, %319 : vector<8x128xf32>
    %334 = arith.addf %332, %333 : vector<8x128xf32>
    %335 = arith.mulf %151, %311 : vector<8x128xf32>
    %336 = arith.mulf %152, %314 : vector<8x128xf32>
    %337 = arith.addf %335, %336 : vector<8x128xf32>
    %338 = arith.mulf %153, %317 : vector<8x128xf32>
    %339 = arith.addf %337, %338 : vector<8x128xf32>
    %340 = arith.mulf %151, %312 : vector<8x128xf32>
    %341 = arith.mulf %152, %315 : vector<8x128xf32>
    %342 = arith.addf %340, %341 : vector<8x128xf32>
    %343 = arith.mulf %153, %318 : vector<8x128xf32>
    %344 = arith.addf %342, %343 : vector<8x128xf32>
    %345 = arith.mulf %151, %313 : vector<8x128xf32>
    %346 = arith.mulf %152, %316 : vector<8x128xf32>
    %347 = arith.addf %345, %346 : vector<8x128xf32>
    %348 = arith.mulf %153, %319 : vector<8x128xf32>
    %349 = arith.addf %347, %348 : vector<8x128xf32>
    %350 = arith.mulf %154, %311 : vector<8x128xf32>
    %351 = arith.mulf %155, %314 : vector<8x128xf32>
    %352 = arith.addf %350, %351 : vector<8x128xf32>
    %353 = arith.mulf %156, %317 : vector<8x128xf32>
    %354 = arith.addf %352, %353 : vector<8x128xf32>
    %355 = arith.mulf %154, %312 : vector<8x128xf32>
    %356 = arith.mulf %155, %315 : vector<8x128xf32>
    %357 = arith.addf %355, %356 : vector<8x128xf32>
    %358 = arith.mulf %156, %318 : vector<8x128xf32>
    %359 = arith.addf %357, %358 : vector<8x128xf32>
    %360 = arith.mulf %154, %313 : vector<8x128xf32>
    %361 = arith.mulf %155, %316 : vector<8x128xf32>
    %362 = arith.addf %360, %361 : vector<8x128xf32>
    %363 = arith.mulf %156, %319 : vector<8x128xf32>
    %364 = arith.addf %362, %363 : vector<8x128xf32>
    %365 = arith.mulf %324, %324 : vector<8x128xf32>
    %366 = arith.mulf %329, %329 : vector<8x128xf32>
    %367 = arith.addf %365, %366 : vector<8x128xf32>
    %368 = arith.mulf %334, %334 : vector<8x128xf32>
    %369 = arith.addf %367, %368 : vector<8x128xf32>
    %c3_84 = arith.constant 3 : index
    %c0_85 = arith.constant 0 : index
    %c0_86 = arith.constant 0 : index
    %370 = vector.load %arg5[%c3_84, %c0_85, %c0_86] : memref<19x8x128xf32, #tpu.memory_space<vmem>>, vector<1x8x128xf32>
    %371 = vector.shape_cast %370 : vector<1x8x128xf32> to vector<8x128xf32>
    %372 = vector.shape_cast %369 : vector<8x128xf32> to vector<1x8x128xf32>
    tpu.vector_store %arg5[%c3_84, %c0_85, %c0_86], %372 {strides = array<i32>} : memref<19x8x128xf32, #tpu.memory_space<vmem>>, vector<1x8x128xf32>,
    %373 = arith.mulf %324, %339 : vector<8x128xf32>
    %374 = arith.mulf %329, %344 : vector<8x128xf32>
    %375 = arith.addf %373, %374 : vector<8x128xf32>
    %376 = arith.mulf %334, %349 : vector<8x128xf32>
    %377 = arith.addf %375, %376 : vector<8x128xf32>
    %c4_87 = arith.constant 4 : index
    %c0_88 = arith.constant 0 : index
    %c0_89 = arith.constant 0 : index
    %378 = vector.load %arg5[%c4_87, %c0_88, %c0_89] : memref<19x8x128xf32, #tpu.memory_space<vmem>>, vector<1x8x128xf32>
    %379 = vector.shape_cast %378 : vector<1x8x128xf32> to vector<8x128xf32>
    %380 = vector.shape_cast %377 : vector<8x128xf32> to vector<1x8x128xf32>
    tpu.vector_store %arg5[%c4_87, %c0_88, %c0_89], %380 {strides = array<i32>} : memref<19x8x128xf32, #tpu.memory_space<vmem>>, vector<1x8x128xf32>,
    %381 = arith.mulf %324, %354 : vector<8x128xf32>
    %382 = arith.mulf %329, %359 : vector<8x128xf32>
    %383 = arith.addf %381, %382 : vector<8x128xf32>
    %384 = arith.mulf %334, %364 : vector<8x128xf32>
    %385 = arith.addf %383, %384 : vector<8x128xf32>
    %c5_90 = arith.constant 5 : index
    %c0_91 = arith.constant 0 : index
    %c0_92 = arith.constant 0 : index
    %386 = vector.load %arg5[%c5_90, %c0_91, %c0_92] : memref<19x8x128xf32, #tpu.memory_space<vmem>>, vector<1x8x128xf32>
    %387 = vector.shape_cast %386 : vector<1x8x128xf32> to vector<8x128xf32>
    %388 = vector.shape_cast %385 : vector<8x128xf32> to vector<1x8x128xf32>
    tpu.vector_store %arg5[%c5_90, %c0_91, %c0_92], %388 {strides = array<i32>} : memref<19x8x128xf32, #tpu.memory_space<vmem>>, vector<1x8x128xf32>,
    %389 = arith.mulf %339, %339 : vector<8x128xf32>
    %390 = arith.mulf %344, %344 : vector<8x128xf32>
    %391 = arith.addf %389, %390 : vector<8x128xf32>
    %392 = arith.mulf %349, %349 : vector<8x128xf32>
    %393 = arith.addf %391, %392 : vector<8x128xf32>
    %c6_93 = arith.constant 6 : index
    %c0_94 = arith.constant 0 : index
    %c0_95 = arith.constant 0 : index
    %394 = vector.load %arg5[%c6_93, %c0_94, %c0_95] : memref<19x8x128xf32, #tpu.memory_space<vmem>>, vector<1x8x128xf32>
    %395 = vector.shape_cast %394 : vector<1x8x128xf32> to vector<8x128xf32>
    %396 = vector.shape_cast %393 : vector<8x128xf32> to vector<1x8x128xf32>
    tpu.vector_store %arg5[%c6_93, %c0_94, %c0_95], %396 {strides = array<i32>} : memref<19x8x128xf32, #tpu.memory_space<vmem>>, vector<1x8x128xf32>,
    %397 = arith.mulf %339, %354 : vector<8x128xf32>
    %398 = arith.mulf %344, %359 : vector<8x128xf32>
    %399 = arith.addf %397, %398 : vector<8x128xf32>
    %400 = arith.mulf %349, %364 : vector<8x128xf32>
    %401 = arith.addf %399, %400 : vector<8x128xf32>
    %c7_96 = arith.constant 7 : index
    %c0_97 = arith.constant 0 : index
    %c0_98 = arith.constant 0 : index
    %402 = vector.load %arg5[%c7_96, %c0_97, %c0_98] : memref<19x8x128xf32, #tpu.memory_space<vmem>>, vector<1x8x128xf32>
    %403 = vector.shape_cast %402 : vector<1x8x128xf32> to vector<8x128xf32>
    %404 = vector.shape_cast %401 : vector<8x128xf32> to vector<1x8x128xf32>
    tpu.vector_store %arg5[%c7_96, %c0_97, %c0_98], %404 {strides = array<i32>} : memref<19x8x128xf32, #tpu.memory_space<vmem>>, vector<1x8x128xf32>,
    %405 = arith.mulf %354, %354 : vector<8x128xf32>
    %406 = arith.mulf %359, %359 : vector<8x128xf32>
    %407 = arith.addf %405, %406 : vector<8x128xf32>
    %408 = arith.mulf %364, %364 : vector<8x128xf32>
    %409 = arith.addf %407, %408 : vector<8x128xf32>
    %c8_99 = arith.constant 8 : index
    %c0_100 = arith.constant 0 : index
    %c0_101 = arith.constant 0 : index
    %410 = vector.load %arg5[%c8_99, %c0_100, %c0_101] : memref<19x8x128xf32, #tpu.memory_space<vmem>>, vector<1x8x128xf32>
    %411 = vector.shape_cast %410 : vector<1x8x128xf32> to vector<8x128xf32>
    %412 = vector.shape_cast %409 : vector<8x128xf32> to vector<1x8x128xf32>
    tpu.vector_store %arg5[%c8_99, %c0_100, %c0_101], %412 {strides = array<i32>} : memref<19x8x128xf32, #tpu.memory_space<vmem>>, vector<1x8x128xf32>,
    %413 = arith.mulf %157, %171 : vector<8x128xf32>
    %414 = arith.mulf %158, %173 : vector<8x128xf32>
    %415 = arith.addf %413, %414 : vector<8x128xf32>
    %416 = arith.addf %415, %159 : vector<8x128xf32>
    %417 = arith.mulf %160, %171 : vector<8x128xf32>
    %418 = arith.mulf %161, %173 : vector<8x128xf32>
    %419 = arith.addf %417, %418 : vector<8x128xf32>
    %420 = arith.addf %419, %162 : vector<8x128xf32>
    %421 = arith.mulf %163, %171 : vector<8x128xf32>
    %422 = arith.mulf %164, %173 : vector<8x128xf32>
    %423 = arith.addf %421, %422 : vector<8x128xf32>
    %424 = arith.addf %423, %165 : vector<8x128xf32>
    %425 = arith.mulf %416, %416 : vector<8x128xf32>
    %426 = arith.mulf %420, %420 : vector<8x128xf32>
    %427 = arith.addf %425, %426 : vector<8x128xf32>
    %428 = arith.mulf %424, %424 : vector<8x128xf32>
    %429 = arith.addf %427, %428 : vector<8x128xf32>
    %430 = math.rsqrt %429 : vector<8x128xf32>
    %431 = arith.mulf %430, %175 : vector<8x128xf32>
    %432 = arith.mulf %148, %416 : vector<8x128xf32>
    %433 = arith.mulf %149, %420 : vector<8x128xf32>
    %434 = arith.addf %432, %433 : vector<8x128xf32>
    %435 = arith.mulf %150, %424 : vector<8x128xf32>
    %436 = arith.addf %434, %435 : vector<8x128xf32>
    %437 = arith.mulf %436, %431 : vector<8x128xf32>
    %438 = arith.addf %166, %437 : vector<8x128xf32>
    %c0_102 = arith.constant 0 : index
    %c0_103 = arith.constant 0 : index
    %c0_104 = arith.constant 0 : index
    %439 = vector.load %arg5[%c0_102, %c0_103, %c0_104] : memref<19x8x128xf32, #tpu.memory_space<vmem>>, vector<1x8x128xf32>
    %440 = vector.shape_cast %439 : vector<1x8x128xf32> to vector<8x128xf32>
    %441 = vector.shape_cast %438 : vector<8x128xf32> to vector<1x8x128xf32>
    tpu.vector_store %arg5[%c0_102, %c0_103, %c0_104], %441 {strides = array<i32>} : memref<19x8x128xf32, #tpu.memory_space<vmem>>, vector<1x8x128xf32>,
    %442 = arith.mulf %151, %416 : vector<8x128xf32>
    %443 = arith.mulf %152, %420 : vector<8x128xf32>
    %444 = arith.addf %442, %443 : vector<8x128xf32>
    %445 = arith.mulf %153, %424 : vector<8x128xf32>
    %446 = arith.addf %444, %445 : vector<8x128xf32>
    %447 = arith.mulf %446, %431 : vector<8x128xf32>
    %448 = arith.addf %167, %447 : vector<8x128xf32>
    %c1_105 = arith.constant 1 : index
    %c0_106 = arith.constant 0 : index
    %c0_107 = arith.constant 0 : index
    %449 = vector.load %arg5[%c1_105, %c0_106, %c0_107] : memref<19x8x128xf32, #tpu.memory_space<vmem>>, vector<1x8x128xf32>
    %450 = vector.shape_cast %449 : vector<1x8x128xf32> to vector<8x128xf32>
    %451 = vector.shape_cast %448 : vector<8x128xf32> to vector<1x8x128xf32>
    tpu.vector_store %arg5[%c1_105, %c0_106, %c0_107], %451 {strides = array<i32>} : memref<19x8x128xf32, #tpu.memory_space<vmem>>, vector<1x8x128xf32>,
    %452 = arith.mulf %154, %416 : vector<8x128xf32>
    %453 = arith.mulf %155, %420 : vector<8x128xf32>
    %454 = arith.addf %452, %453 : vector<8x128xf32>
    %455 = arith.mulf %156, %424 : vector<8x128xf32>
    %456 = arith.addf %454, %455 : vector<8x128xf32>
    %457 = arith.mulf %456, %431 : vector<8x128xf32>
    %458 = arith.addf %168, %457 : vector<8x128xf32>
    %c2_108 = arith.constant 2 : index
    %c0_109 = arith.constant 0 : index
    %c0_110 = arith.constant 0 : index
    %459 = vector.load %arg5[%c2_108, %c0_109, %c0_110] : memref<19x8x128xf32, #tpu.memory_space<vmem>>, vector<1x8x128xf32>
    %460 = vector.shape_cast %459 : vector<1x8x128xf32> to vector<8x128xf32>
    %461 = vector.shape_cast %458 : vector<8x128xf32> to vector<1x8x128xf32>
    tpu.vector_store %arg5[%c2_108, %c0_109, %c0_110], %461 {strides = array<i32>} : memref<19x8x128xf32, #tpu.memory_space<vmem>>, vector<1x8x128xf32>,
    %c10 = arith.constant 10 : index
    %c0_111 = arith.constant 0 : index
    %c0_112 = arith.constant 0 : index
    %462 = vector.load %arg4[%c10, %c0_111, %c0_112] : memref<13x8x128xf32, #tpu.memory_space<vmem>>, vector<1x8x128xf32>
    %463 = vector.shape_cast %462 : vector<1x8x128xf32> to vector<8x128xf32>
    %c9_113 = arith.constant 9 : index
    %c0_114 = arith.constant 0 : index
    %c0_115 = arith.constant 0 : index
    %464 = vector.load %arg5[%c9_113, %c0_114, %c0_115] : memref<19x8x128xf32, #tpu.memory_space<vmem>>, vector<1x8x128xf32>
    %465 = vector.shape_cast %464 : vector<1x8x128xf32> to vector<8x128xf32>
    %466 = vector.shape_cast %463 : vector<8x128xf32> to vector<1x8x128xf32>
    tpu.vector_store %arg5[%c9_113, %c0_114, %c0_115], %466 {strides = array<i32>} : memref<19x8x128xf32, #tpu.memory_space<vmem>>, vector<1x8x128xf32>,
    %c11 = arith.constant 11 : index
    %c0_116 = arith.constant 0 : index
    %c0_117 = arith.constant 0 : index
    %467 = vector.load %arg4[%c11, %c0_116, %c0_117] : memref<13x8x128xf32, #tpu.memory_space<vmem>>, vector<1x8x128xf32>
    %468 = vector.shape_cast %467 : vector<1x8x128xf32> to vector<8x128xf32>
    %c10_118 = arith.constant 10 : index
    %c0_119 = arith.constant 0 : index
    %c0_120 = arith.constant 0 : index
    %469 = vector.load %arg5[%c10_118, %c0_119, %c0_120] : memref<19x8x128xf32, #tpu.memory_space<vmem>>, vector<1x8x128xf32>
    %470 = vector.shape_cast %469 : vector<1x8x128xf32> to vector<8x128xf32>
    %471 = vector.shape_cast %468 : vector<8x128xf32> to vector<1x8x128xf32>
    tpu.vector_store %arg5[%c10_118, %c0_119, %c0_120], %471 {strides = array<i32>} : memref<19x8x128xf32, #tpu.memory_space<vmem>>, vector<1x8x128xf32>,
    %c12_121 = arith.constant 12 : index
    %c0_122 = arith.constant 0 : index
    %c0_123 = arith.constant 0 : index
    %472 = vector.load %arg4[%c12_121, %c0_122, %c0_123] : memref<13x8x128xf32, #tpu.memory_space<vmem>>, vector<1x8x128xf32>
    %473 = vector.shape_cast %472 : vector<1x8x128xf32> to vector<8x128xf32>
    %c11_124 = arith.constant 11 : index
    %c0_125 = arith.constant 0 : index
    %c0_126 = arith.constant 0 : index
    %474 = vector.load %arg5[%c11_124, %c0_125, %c0_126] : memref<19x8x128xf32, #tpu.memory_space<vmem>>, vector<1x8x128xf32>
    %475 = vector.shape_cast %474 : vector<1x8x128xf32> to vector<8x128xf32>
    %476 = vector.shape_cast %473 : vector<8x128xf32> to vector<1x8x128xf32>
    tpu.vector_store %arg5[%c11_124, %c0_125, %c0_126], %476 {strides = array<i32>} : memref<19x8x128xf32, #tpu.memory_space<vmem>>, vector<1x8x128xf32>,
    return
  }
  func.func @transform_0(%arg0: i32, %arg1: i32, %arg2: memref<64xf32, #tpu.memory_space<smem>>, %arg3: memref<36xf32, #tpu.memory_space<smem>>) -> (i32, i32, i32) {
    %c2_i32 = arith.constant 2 : i32
    %0 = arith.muli %arg0, %c2_i32 : i32
    %1 = arith.addi %0, %arg1 : i32
    %c0_i32 = arith.constant 0 : i32
    %c0_i32_0 = arith.constant 0 : i32
    %c0_i32_1 = arith.constant 0 : i32
    return %c0_i32, %1, %c0_i32_0 : i32, i32, i32
  }
  func.func @transform_1(%arg0: i32, %arg1: i32, %arg2: memref<64xf32, #tpu.memory_space<smem>>, %arg3: memref<36xf32, #tpu.memory_space<smem>>) -> (i32, i32, i32) {
    %c2_i32 = arith.constant 2 : i32
    %0 = arith.muli %arg0, %c2_i32 : i32
    %1 = arith.addi %0, %arg1 : i32
    %c0_i32 = arith.constant 0 : i32
    %c0_i32_0 = arith.constant 0 : i32
    %c0_i32_1 = arith.constant 0 : i32
    return %c0_i32, %1, %c0_i32_0 : i32, i32, i32
  }
}

</mosaic_0001>

<bundles_post_ra>
// kernel: tpu_custom_call.1
= control target key start
LH: loop header
LB: loop body
LE: loop exit
PB: predicated region body
PF: predicated region fallthrough
CT: control target
= control target key end

     0   :  { %s1516_s0 = inlined_call_operand.hbm [shape: f32[64], index: 0, kind: input, shape index: {}]   ;;  %s1517_s2 = inlined_call_operand.hbm [shape: f32[13,64,128], index: 2, kind: input, shape index: {}]   ;;  %s1518_s3 = inlined_call_operand.hbm [shape: f32[19,64,128], index: 3, kind: output, shape index: {}]   ;;  %s1519_s1 = inlined_call_operand.vmem [shape: f32[36], index: 1, kind: input, shape index: {}]  }
   0x1   :  { %1534 = sst [smem:[#allocation23_spill]] %s1517_s2  ;;  %s831_s14 = scalar_lea.hbm %s1516_s0, 16 }
   0x2   :  { %1535 = sst [smem:[#allocation24_spill]] %s1518_s3  ;;  %p832_p0 = scmp.ne.s32.totalorder %s1516_s0, %s831_s14 }
   0x3   :  { %p835_p1 = scmp.lt.u32.totalorder %s831_s14, %s1516_s0 }
   0x5   :  { %p837_p2 = pnand %p835_p1, %p832_p0 }
   0x7   :  { %840 = shalt.err (!%p837_p2)  }
   0x8   :  { %s985_s19 = smov [#allocation3]   ;;  %s10_s24 = sshll.u32 %s1519_s1, 4  ;;  %s11_s24 = int_to_ptr.vmem [resolvable:$true] %s10_s24 }
   0x9   :  { %9 = dma.hbm_to_smem %s1516_s0, 16, %s985_s19, [#allocation2] }
   0xa   :  { %s841_s25 = scalar_lea.vmem %s11_s24, 16  ;;  %p846_p4 = scmp.lt.s32.totalorder %s11_s24, %s11_s24 }
   0xb   :  { %p842_p3 = scmp.ne.s32.totalorder %s11_s24, %s841_s25  ;;  %p847_p5 = scmp.lt.s32.totalorder %s841_s25, %s841_s25 }
   0xd   :  { %p848_p6 = por %p847_p5, %p846_p4 }
   0xf   :  { %p849_p7 = pnand %p848_p6, %p842_p3 }
  0x11   :  { %852 = shalt.err (!%p849_p7)  }
  0x12   :  { %s986_s26 = smov [#allocation4]  }
  0x13   :  { %13 = dma.vmem_to_smem %s11_s24, 16, %s986_s26, [#allocation2] }
  0x14   :  { %943 = dma.done.wait [#allocation2], 32 }
  0x15   :  { %944 = vsyncadd [#allocation2], 4294967264 }
  0x16   :  { %15 = sfence }
  0x17   :  { %16 = vsyncpa [#allocation6], 0 }
  0x18   :  { %18 = vsyncpa [#allocation6 + $0x1], 0 }
  0x19   :  { %19 = vsyncpa [#allocation7], 0 }
  0x1a   :  { %21 = vsyncpa [#allocation7 + $0x1], 0  ;;  %s1030_s0 = smov 0   ;;  %s1032_s1 = smov 0  }
  0x1b   :  { %s1034_s27 = smov 0   ;;  %s1036_s28 = smov 0  }
  0x1c   :  { %s1038_s29 = smov 0   ;;  %s1040_s30 = smov 0  }
  0x1d   :  { %s1042_s4 = smov 0   ;;  %s1044_s5 = smov 0  }
  0x1e LB: > { %1536 = sst [smem:[#allocation12_spill]] %s955_s0  ;;  %s665_s6 = sadd.s32 4294967295, %s983_s5   ;;  %s983_s5 = sphi %s1044_s5, %s27_s5   ;;  %s979_s4 = sphi %s1042_s4, %s1568_s4   ;;  %s975_s30 = sphi %s1040_s30, %s1567_s30   ;;  %s971_s29 = sphi %s1038_s29, %s1566_s29   ;;  %s967_s28 = sphi %s1036_s28, %s1565_s28   ;;  %s963_s27 = sphi %s1034_s27, %s1564_s27   ;;  %s959_s1 = sphi %s1032_s1, %s1563_s1   ;;  %s955_s0 = sphi %s1030_s0, %s1562_s0  }
  0x1f   : > { %1537 = sst [smem:[#allocation13_spill]] %s959_s1  ;;  %s666_s7 = sadd.s32 4294967294, %s983_s5  }
  0x20   : > { %1538 = sst [smem:[#allocation14_spill]] %s963_s27  ;;  %s36_s8 = sadd.s32 1, %s975_s30 }
  0x21   : > { %1539 = sst [smem:[#allocation15_spill]] %s975_s30  ;;  %s39_s9 = sadd.s32 1, %s979_s4 }
  0x22   : > { %1540 = sst [smem:[#allocation16_spill]] %s979_s4  ;;  %p37_p8 = scmp.ge.s32.totalorder %s36_s8, 2 }
  0x23   : > { %1541 = sst [smem:[#allocation17_spill]] %s983_s5  ;;  %s667_s10 = sshll.u32 %s979_s4, 1 }
  0x24   : > { %s44_s11 = sadd.s32 %s975_s30, %s667_s10  ;;  %s50_s12 = sadd.s32 1, %s963_s27 }
  0x25   : > { %s1570_s8 = smov (%p37_p8, %s36_s8), 0  ;;  %s1572_s9 = smov (!%p37_p8, %s39_s9), %s979_s4 }
  0x26   : > { %1542 = sst [smem:[#allocation18_spill]] %s1570_s8  ;;  %p57_p9 = scmp.ne.s32.totalorder %s963_s27, %s959_s1 }
  0x27   : > { %p58_p10 = scmp.eq.s32.totalorder %s983_s5, 0  ;;  %p41_p11 = scmp.ge.s32.totalorder %s1572_s9, 4 }
  0x28   : > { %p63_p12 = scmp.ne.s32.totalorder %s959_s1, %s955_s0  ;;  %p64_p0 = scmp.eq.s32.totalorder %s665_s6, 0 }
  0x29   : > { %p1085_p13 = por %p58_p10, %p57_p9  ;;  %s1574_s9 = smov (%p41_p11, %s1572_s9), 0 }
  0x2a   : > { %1544 = sst [smem:[#allocation19_spill]] %s1574_s9  ;;  %p1091_p1 = por %p64_p0, %p63_p12 }
  0x2b   : > { %p91_p2 = scmp.eq.s32.totalorder %s665_s6, 7  ;;  %s668_s15 = sshll.u32 %s1574_s9, 1 }
  0x2c   : > { %p97_p3 = scmp.eq.s32.totalorder %s666_s7, 7  ;;  %s46_s16 = sadd.s32 %s668_s15, %s1570_s8 }
  0x2d   : > { %p1097_p4 = por %p91_p2, %p57_p9  ;;  %s47_s18 = ssub.s32 %s44_s11, %s46_s16 }
  0x2e   : > { %p1101_p5 = por %p97_p3, %p63_p12  ;;  %p48_p6 = scmp.eq.s32.totalorder %s47_s18, 0 }
  0x2f   : > { %s1546_s17 = scalar_select %p1097_p4, 1, 0 }
  0x30   : > { %s1548_s19 = scalar_select %p1101_p5, 1, 0 }
  0x31   : > { %1547 = sst [smem:[#allocation20_spill]] %s1546_s17  ;;  %p733_p7 = scmp.lt.s32.totalorder %s983_s5, 8 }
  0x32   : > { %1549 = sst [smem:[#allocation21_spill]] %s1548_s19  ;;  %s117_s20 = sand.u32 1, %s963_s27  }
  0x33   : > { %s1108_s21 = scalar_select %p48_p6, %s963_s27, %s50_s12  }
  0x34   : > { %s714_s22 = smul.u32 104, %s117_s20  ;;  %s674_s23 = sshll.u32 %s44_s11, 7 }
  0x35   : > { %1550 = sst [smem:[#allocation22_spill]] %s1108_s21  ;;  %p1112_p8 = pnand %p733_p7, %p1085_p13 }
  0x36   : > { %s1552_s2 = sld [smem:[#allocation23_spill]]  ;;  %s121_s7 = scalar_lea.vmem [#allocation5], %s714_s22 }
  0x37   : > { %s129_s10 = sshll.u32 %s121_s7, 4  ;;  %s1123_s11 = scalar_lea.sflag [#allocation6], %s117_s20  ;;  %s1121_s10 = int_to_ptr.vmem [resolvable:$true] %s129_s10 }
  0x38   : > { %p855_p10 = pneg %p1112_p8 }
  0x3c   : > { %s1119_s6 = scalar_lea.hbm %s1552_s2, %s674_s23  ;;  %s858_s16 = scalar_lea.hbm %s1552_s2, 13312 }
  0x3d   : > { %s853_s12 = scalar_lea.hbm %s1119_s6, 1664  ;;  %p859_p13 = scmp.lt.u32.totalorder %s1119_s6, %s1552_s2 }
  0x3e   : > { %p854_p9 = scmp.ne.s32.totalorder %s1119_s6, %s853_s12  ;;  %p860_p0 = scmp.lt.u32.totalorder %s858_s16, %s853_s12 }
  0x3f   : > { %p862_p3 = scmp.lt.u32.totalorder %s853_s12, %s1119_s6 }
  0x40   : > { %p856_p11 = pnand %p855_p10, %p854_p9  ;;  %p861_p2 = por %p860_p0, %p859_p13 }
  0x42   : > { %p857_p12 = pneg %p856_p11  ;;  %p863_p6 = por %p862_p3, %p861_p2 }
  0x44   : > { %p864_p7 = pnand %p863_p6, %p857_p12 }
  0x46   : > { %867 = shalt.err (!%p864_p7)
}
  0x47   : > { %s868_s20 = scalar_lea.vmem %s1121_s10, 1664  ;;  %s987_s22 = smov [#allocation5]  }
  0x48   : > { %p869_p9 = scmp.ne.s32.totalorder %s1121_s10, %s868_s20  ;;  %s873_s25 = sshll.u32 %s987_s22, 4  ;;  %s874_s25 = int_to_ptr.vmem [resolvable:$false] %s873_s25 }
  0x49   : > { %s875_s26 = scalar_lea.vmem %s874_s25, 3328  ;;  %p876_p4 = scmp.lt.s32.totalorder %s1121_s10, %s874_s25 }
  0x4a   : > { %p871_p11 = pnand %p869_p9, %p855_p10  ;;  %p877_p13 = scmp.lt.s32.totalorder %s875_s26, %s868_s20 }
  0x4c   : > { %p872_p5 = pneg %p871_p11  ;;  %p878_p0 = por %p877_p13, %p876_p4 }
  0x4e   : > { %p879_p2 = pnand %p878_p0, %p872_p5 }
  0x50   : > { %882 = shalt.err (!%p879_p2)
}
  0x51   : > { %s988_s7 = smov 1024   ;;  %s989_s12 = smov 128  }
  0x52   : > { %s990_s13 = smov 8   ;;  %p675_p10 = scmp.ge.s32.totalorder %s983_s5, 1 }
  0x53   : > { %728 = dma.hbm_to_vmem [thread:$0]  (!%p1112_p8), %s1119_s6, 1664, %s1121_s10, %s1123_s11, %s988_s7, %s989_s12, %s990_s13  }
  0x54   : > { %p137_p12 = scmp.lt.s32.totalorder %s983_s5, 9 }
  0x56   : > { %p138_p3 = pnand %p675_p10, %p137_p12 }
  0x57   : > { %s1154_s15 = sand.u32 (!%p138_p3), 1, %s959_s1  }
  0x58   : > { %141 = sbr.rel (%p138_p3) target bundleno = 249 (0xf9), region = 24  ;;  %s144_s18 = scalar_lea.sflag (!%p138_p3), [#allocation6], %s1154_s15 }
  0x59   : > { %s715_s16 = smul.u32 (!%p138_p3), 104, %s1154_s15 }
  0x5b   : > { %s1158_s23 = scalar_lea.vmem (!%p138_p3), [#allocation5], %s715_s16 }
  0x5f   : > { %946 = dma.done.wait (%p1091_p1), %s144_s18, 1664  }
  0x60   : > { %948 = vsyncadd (%p1091_p1), %s144_s18, 4294965632  ;;  %s1165_s24 = smul.u32 9, %s971_s29  ;;  %v1191_v0 = vld [vmem:[%s1158_s23 + $0x30] sm:$0xff]  ;;  %v1194_v1 = vld [vmem:[%s1158_s23 + $0x38] sm:$0xff] }
  0x61   : > { %s716_s7 = smul.u32 152, %s1154_s15  ;;  %v1201_v2 = vld [vmem:[%s1158_s23 + $0x40] sm:$0xff]  ;;  %v1204_v3 = vld [vmem:[%s1158_s23 + $0x48] sm:$0xff]  ;;  %v345_v4 = vmul.f32 %v1191_v0, %v1191_v0  ;;  %v346_v5 = vmul.f32 %v1194_v1, %v1194_v1  ;;  %v704_v7 = vld [vmem:[%s1158_s23 + $0x50] sm:$0xff] }
  0x62   : > { %s1168_s6 = sld [smem:[#allocation4 + %s1165_s24]]  ;;  %s196_s10 = sadd.s32 1, %s1165_s24  ;;  %v348_v6 = vmul.f32 %v1201_v2, %v1201_v2  ;;  %v706_v8 = vld [vmem:[%s1158_s23 + $0x58] sm:$0xff]  ;;  %v350_v10 = vmul.f32 %v1204_v3, %v1204_v3  ;;  %v708_v11 = vld [vmem:[%s1158_s23 + $0x60] sm:$0xff]  ;;  %v685_v26 = vld [vmem:[%s1158_s23 + $0x28] sm:$0xff] }
  0x63   : > { %s1171_s11 = sld [smem:[#allocation4 + %s196_s10]]  ;;  %s200_s14 = sadd.s32 3, %s1165_s24  ;;  %v347_v9 = vadd.f32 %v346_v5, %v345_v4  ;;  %v679_v23 = vld [vmem:[%s1158_s23 + $0x18] sm:$0xff]  ;;  %v682_v24 = vld [vmem:[%s1158_s23 + $0x20] sm:$0xff]  ;;  %v686_v29 = vmul.f32 -1.442695, %v685_v26 }
  0x64   : > { %s1174_s20 = sld [smem:[#allocation4 + %s200_s14]]  ;;  %s202_s22 = sadd.s32 4, %s1165_s24  ;;  %v680_v25 = vmul.f32 -1.442695, %v679_v23  ;;  %v683_v28 = vmul.f32 -1.442695, %v682_v24 }
  0x65   : > { %s1177_s25 = sld [smem:[#allocation4 + %s202_s22]]  ;;  %s204_s26 = sadd.s32 5, %s1165_s24  ;;  %v349_v12 = vadd.f32 %v348_v6, %v347_v9 }
  0x66   : > { %s1181_s12 = sld [smem:[#allocation4 + %s204_s26]]  ;;  %s206_s13 = sadd.s32 6, %s1165_s24 }
  0x67   : > { %s1184_s16 = sld [smem:[#allocation4 + %s206_s13]]  ;;  %s208_s18 = sadd.s32 7, %s1165_s24  ;;  %v351_v14 = vadd.f32 %v350_v10, %v349_v12 }
  0x68   : > { %s1187_s10 = sld [smem:[#allocation4 + %s208_s18]]  ;;  %s210_s14 = sadd.s32 8, %s1165_s24 }
  0x69   : > { %s1198_s2 = sld [smem:[#allocation4 + %s210_s14]]  ;;  %s198_s13 = sadd.s32 2, %s1165_s24  ;;  %vm354_vm0 = vcmp.eq.f32.partialorder %v351_v14, inf  ;;  %v357_v18 = vand.u32 2147483648, %v351_v14  ;;  %vm356_vm1 = vcmp.eq.f32.partialorder %v351_v14, 0.0 }
  0x6a   : > { %s213_s22 = smul.f32 %s1174_s20, %s1171_s11  ;;  %s1219_s18 = scalar_lea.vmem [#allocation8], %s716_s7 }
  0x6b   : > { %s212_s26 = smul.f32 %s1177_s25, %s1168_s6  ;;  %705 = vst [vmem:[%s1219_s18 + $0x48] sm:$0xff] %v704_v7  ;;  %707 = vst [vmem:[%s1219_s18 + $0x50] sm:$0xff] %v706_v8  ;;  %s1232_s7 = sld [smem:[#allocation4 + %s198_s13]]  ;;  %v1350_v8 = vld [vmem:[%s1158_s23 + $0x10] sm:$0xff] }
  0x6c   : > { %709 = vst [vmem:[%s1219_s18 + $0x58] sm:$0xff] %v708_v11 }
  0x6d   : > { %s1224_s14 = ssub.f32 %s212_s26, %s213_s22  ;;  %s1229_s24 = smul.f32 %s1184_s16, %s1181_s12 }
  0x6e   : > { %s229_s9 = smul.f32 %s1187_s10, %s1181_s12 }
  0x6f   : > { %v224_v13 = vstv %s1224_s14  ;;  %s228_s8 = smul.f32 %s1198_s2, %s1177_s25 }
  0x70   : > { %807 = vrcp.f32 %v224_v13  ;;  %s1240_s4 = smul.f32 %s1198_s2, %s1174_s20 }
  0x71   : > { %s1242_s22 = ssub.f32 %s228_s8, %s229_s9  ;;  %s237_s26 = smul.f32 %s1187_s10, %s1174_s20  ;;  %809 = vrsqrt.f32 %v351_v14 }
  0x72   : > { %s234_s30 = ssub.f32 %s1240_s4, %s1229_s24  ;;  %s238_s21 = smul.f32 %s1184_s16, %s1177_s25 }
  0x73   : > { %s231_s27 = smul.f32 %s1242_s22, %s1168_s6 }
  0x74   : > { %s235_s13 = smul.f32 %s234_s30, %s1171_s11  ;;  %s1255_s19 = ssub.f32 %s237_s26, %s238_s21 }
  0x75   : > { %s256_s8 = smul.f32 %s1198_s2, %s1168_s6 }
  0x76   : > { %s236_s0 = ssub.f32 %s231_s27, %s235_s13  ;;  %s240_s5 = smul.f32 %s1255_s19, %s1232_s7 }
  0x77   : > { %s250_s27 = smul.f32 %s1181_s12, %s1171_s11 }
  0x78   : > { %s241_s3 = sadd.f32 %s240_s5, %s236_s0  ;;  %s246_s0 = smul.f32 %s1187_s10, %s1232_s7 }
  0x79   : > { %s251_s5 = smul.f32 %s1177_s25, %s1232_s7 }
  0x7a   : > { %v808_v15 = vpop.eup %807  ;;  %v242_v16 = vstv %s241_s3  ;;  %s247_s3 = smul.f32 %s1198_s2, %s1171_s11 }
  0x7b   : > { %717 = vpush %v808_v15  ;;  %v810_v17 = vpop.eup %809  ;;  %811 = vrcp.f32 %v242_v16  ;;  %s1274_s9 = ssub.f32 %s250_s27, %s251_s5  ;;  %s257_s21 = smul.f32 %s1184_s16, %s1232_s7 }
  0x7c   : > { %v353_v19 = vmul.f32 %v810_v17, %v351_v14  ;;  %s1268_s30 = ssub.f32 %s246_s0, %s247_s3  ;;  %s260_s26 = smul.f32 %s1174_s20, %s1232_s7 }
  0x7d   : > { %s1280_s13 = ssub.f32 %s256_s8, %s257_s21  ;;  %s261_s0 = smul.f32 %s1181_s12, %s1168_s6 }
  0x7e   : > { %v355_v20 = vsel %vm354_vm0, %v351_v14, %v353_v19  ;;  %s265_s3 = smul.f32 %s1184_s16, %s1171_s11 }
  0x7f   : > { %v358_v21 = vsel %vm356_vm1, %v357_v18, %v355_v20  ;;  %s1286_s1 = ssub.f32 %s260_s26, %s261_s0  ;;  %s266_s17 = smul.f32 %s1187_s10, %s1168_s6 }
  0x80   : > { %v359_v22 = vadd.f32 1e-08, %v358_v21  ;;  %s215_s12 = smul.f32 0.125, %s1177_s25  ;;  %s1307_s10 = sshll.u32 %s971_s29, 4 }
  0x81   : > { %s1294_s2 = ssub.f32 %s265_s3, %s266_s17  ;;  %s216_s16 = smul.f32 0.125, %s1171_s11 }
  0x82   : > { %813 = vrcp.f32 %v359_v22  ;;  %s218_s17 = ssub.f32 0.0, %s1174_s20  ;;  %s220_s27 = smul.f32 0.125, %s1168_s6 }
  0x83   : > { %815 = vpow2.f32 %v680_v25  ;;  %s172_s5 = sadd.s32 1, %s1307_s10  ;;  %s217_s20 = ssub.f32 %s215_s12, %s216_s16 }
  0x84   : > { %817 = vpow2.f32 %v683_v28  ;;  %s219_s7 = smul.f32 0.125, %s218_s17  ;;  %s174_s8 = sadd.s32 2, %s1307_s10 }
  0x85   : > { %v812_v27 = vpop.eup %811  ;;  %819 = vpow2.f32 %v686_v29  ;;  %s1313_s21 = sld [smem:[#allocation3 + %s1307_s10]]  ;;  %s178_s26 = sadd.s32 4, %s1307_s10 }
  0x86   : > { %719 = vpush %v812_v27  ;;  %s221_s25 = sadd.f32 %s220_s27, %s219_s7  ;;  %s1315_s11 = sld [smem:[#allocation3 + %s172_s5]] }
  0x87   : > { %s180_s0 = sadd.s32 5, %s1307_s10  ;;  %s1319_s3 = sld [smem:[#allocation3 + %s174_s8]] }
  0x88   : > { %s222_s6 = sadd.f32 %s221_s25, %s217_s20  ;;  %s1321_s17 = sld [smem:[#allocation3 + %s178_s26]] }
  0x89   : > { %s1323_s12 = sld [smem:[#allocation3 + %s180_s0]]  ;;  %s182_s16 = sadd.s32 6, %s1307_s10 }
  0x8a   : > { %s186_s7 = sadd.s32 8, %s1307_s10  ;;  %s188_s27 = sadd.s32 9, %s1307_s10 }
  0x8b   : > { %s190_s5 = sadd.s32 10, %s1307_s10  ;;  %s1329_s20 = smul.f32 0.1, %s222_s6 }
  0x8c   : > { %v814_v30 = vpop.eup %813  ;;  %s1331_s8 = sld [smem:[#allocation3 + %s182_s16]] }
  0x8d   : > { %v361_v31 = vmul.f32 %v814_v30, %v1191_v0  ;;  %v362_v32 = vmul.f32 %v814_v30, %v1194_v1  ;;  %v363_v33 = vmul.f32 %v814_v30, %v1201_v2  ;;  %v364_v34 = vmul.f32 %v814_v30, %v1204_v3  ;;  %v816_v40 = vpop.eup %815  ;;  %s1333_s25 = sld [smem:[#allocation3 + %s186_s7]] }
  0x8e   : > { %v818_v42 = vpop.eup %817  ;;  %v303_v44 = vadd.f32 1.0, %v816_v40  ;;  %s1335_s26 = sld [smem:[#allocation3 + %s188_s27]]  ;;  %v1340_v1 = vstv %s1313_s21  ;;  %v1343_v2 = vstv %s1315_s11  ;;  %v1346_v4 = vstv %s1319_s3  ;;  %s710_s27 = sshll.u32 %s971_s29, 1 }
  0x8f   : > { %692 = vst [vmem:[%s1219_s18 + $0x78] sm:$0xff] %v361_v31  ;;  %693 = vst [vmem:[%s1219_s18 + $0x80] sm:$0xff] %v362_v32  ;;  %v373_v35 = vmul.f32 %v361_v31, %v361_v31  ;;  %v374_v36 = vmul.f32 %v362_v32, %v362_v32  ;;  %v376_v37 = vmul.f32 %v363_v33, %v363_v33  ;;  %v820_v43 = vpop.eup %819  ;;  %v316_v46 = vadd.f32 1.0, %v818_v42  ;;  %s1337_s0 = sld [smem:[#allocation3 + %s190_s5]]  ;;  %s571_s5 = sadd.s32 %s967_s28, %s710_s27 }
  0x90   : > { %694 = vst [vmem:[%s1219_s18 + $0x88] sm:$0xff] %v363_v33  ;;  %695 = vst [vmem:[%s1219_s18 + $0x90] sm:$0xff] %v364_v34  ;;  %v378_v39 = vmul.f32 %v364_v34, %v364_v34  ;;  %v329_v48 = vadd.f32 1.0, %v820_v43  ;;  %821 = vrcp.f32 %v303_v44  ;;  %v386_v53 = vmul.f32 %v362_v32, %v361_v31  ;;  %s1555_s29 = sld [smem:[#allocation24_spill]] }
  0x91   : > { %v1300_v38 = vadd.f32 %v374_v36, %v373_v35  ;;  %v387_v54 = vmul.f32 %v364_v34, %v363_v33  ;;  %v383_v56 = vadd.f32 %v376_v37, %v374_v36  ;;  %v390_v57 = vmul.f32 %v363_v33, %v361_v31 }
  0x92   : > { %v391_v58 = vmul.f32 %v364_v34, %v362_v32  ;;  %v396_v59 = vadd.f32 %v376_v37, %v373_v35  ;;  %v399_v60 = vmul.f32 %v363_v33, %v362_v32  ;;  %v400_v61 = vmul.f32 %v364_v34, %v361_v31 }
  0x93   : > { %v377_v41 = vadd.f32 %v376_v37, %v1300_v38  ;;  %v388_v3 = vsub.f32 %v386_v53, %v387_v54  ;;  %v394_v7 = vadd.f32 %v387_v54, %v386_v53  ;;  %v1354_v17 = vstv %s1321_s17  ;;  %s1553_s17 = ssub.f32 %s1229_s24, %s1240_s4 }
  0x94   : > { %v392_v6 = vadd.f32 %v391_v58, %v390_v57  ;;  %v401_v10 = vsub.f32 %v399_v60, %v400_v61  ;;  %v403_v11 = vsub.f32 %v390_v57, %v391_v58  ;;  %v405_v12 = vadd.f32 %v400_v61, %v399_v60 }
  0x95   : > { %v379_v45 = vadd.f32 %v378_v39, %v377_v41  ;;  %v1357_v18 = vstv %s1323_s12  ;;  %v1361_v33 = vstv %s1331_s8  ;;  %v1364_v34 = vstv %s1333_s25  ;;  %s577_s8 = sshll.u32 %s1219_s18, 4  ;;  %s1554_s25 = sld [smem:[#allocation20_spill]]  ;;  %s1459_s8 = int_to_ptr.vmem [resolvable:$true] %s577_s8 }
  0x96   : > { %v1367_v35 = vstv %s1335_s26  ;;  %v1370_v36 = vstv %s1337_s0  ;;  %s563_s0 = scalar_lea.sflag [#allocation7], %s1154_s15 }
  0x97   : > { %v380_v47 = vadd.f32 1e-08, %v379_v45 }
  0x99   : > { %823 = vrcp.f32 %v380_v47 }
  0x9a   : > { %825 = vrcp.f32 %v316_v46  ;;  %v822_v49 = vpop.eup %821 }
  0x9b   : > { %827 = vrcp.f32 %v329_v48  ;;  %v306_v62 = vmul.f32 14.5, %v822_v49  ;;  %p1557_p4 = scmp.ne.s32.totalorder %s1554_s25, 0 }
  0x9d   : > { %v307_v13 = vadd.f32 0.5, %v306_v62 }
  0xa3   : > { %v824_v50 = vpop.eup %823 }
  0xa4   : > { %v826_v51 = vpop.eup %825  ;;  %v382_v55 = vmul.f32 2.0, %v824_v50 }
  0xa5   : > { %v828_v52 = vpop.eup %827  ;;  %v319_v63 = vmul.f32 14.5, %v826_v51 }
  0xa6   : > { %v332_v0 = vmul.f32 14.5, %v828_v52  ;;  %v384_v5 = vmul.f32 %v383_v56, %v382_v55  ;;  %v397_v9 = vmul.f32 %v396_v59, %v382_v55  ;;  %v407_v16 = vmul.f32 %v382_v55, %v1300_v38 }
  0xa7   : > { %v320_v14 = vadd.f32 0.5, %v319_v63  ;;  %v389_v20 = vmul.f32 %v388_v3, %v382_v55  ;;  %v393_v23 = vmul.f32 %v392_v6, %v382_v55  ;;  %v395_v24 = vmul.f32 %v394_v7, %v382_v55 }
  0xa8   : > { %v333_v15 = vadd.f32 0.5, %v332_v0  ;;  %v385_v22 = vsub.f32 1.0, %v384_v5  ;;  %v398_v25 = vsub.f32 1.0, %v397_v9  ;;  %v402_v26 = vmul.f32 %v401_v10, %v382_v55 }
  0xa9   : > { %v404_v27 = vmul.f32 %v403_v11, %v382_v55  ;;  %v406_v28 = vmul.f32 %v405_v12, %v382_v55  ;;  %v408_v32 = vsub.f32 1.0, %v407_v16 }
  0xac   : > { %s718_s6 = spop %717 }
  0xad   : > { %s227_s16 = smul.f32 %s718_s6, %s1329_s20  ;;  %s711_s20 = sshll.u32 %s571_s5, 7 }
  0xae   : > { %s1556_s6 = smov %s1555_s29  ;;  %s1457_s28 = scalar_lea.hbm %s1555_s29, %s711_s20 }
  0xaf   : > { %v291_v19 = vstv %s227_s16  ;;  %s883_s16 = scalar_lea.vmem %s1459_s8, 2432 }
  0xb0   : > { %v297_v21 = vmul.f32 %v1350_v8, %v291_v19  ;;  %p884_p1 = scmp.ne.s32.totalorder %s1459_s8, %s883_s16 }
  0xb2   : > { %v308_v29 = vmul.f32 %v307_v13, %v297_v21  ;;  %v321_v30 = vmul.f32 %v320_v14, %v297_v21  ;;  %v334_v31 = vmul.f32 %v333_v15, %v297_v21  ;;  %p885_p5 = pnand %p884_p1, %p1557_p4 }
  0xb4   : > { %681 = vst [vmem:[%s1219_s18 + $0x60] sm:$0xff] %v308_v29  ;;  %684 = vst [vmem:[%s1219_s18 + $0x68] sm:$0xff] %v321_v30  ;;  %v409_v37 = vmul.f32 %v385_v22, %v308_v29  ;;  %v410_v38 = vmul.f32 %v389_v20, %v321_v30  ;;  %v411_v39 = vmul.f32 %v393_v23, %v334_v31  ;;  %p886_p8 = pneg %p885_p5 }
  0xb5   : > { %687 = vst [vmem:[%s1219_s18 + $0x70] sm:$0xff] %v334_v31  ;;  %v412_v40 = vmul.f32 %v395_v24, %v308_v29  ;;  %v413_v41 = vmul.f32 %v398_v25, %v321_v30  ;;  %v414_v42 = vmul.f32 %v402_v26, %v334_v31  ;;  %v415_v43 = vmul.f32 %v404_v27, %v308_v29 }
  0xb6   : > { %v416_v44 = vmul.f32 %v406_v28, %v321_v30  ;;  %v417_v45 = vmul.f32 %v408_v32, %v334_v31  ;;  %v418_v46 = vmul.f32 %v409_v37, %v1340_v1  ;;  %v423_v48 = vmul.f32 %v410_v38, %v1340_v1 }
  0xb7   : > { %v419_v47 = vmul.f32 %v412_v40, %v1343_v2  ;;  %v421_v49 = vmul.f32 %v415_v43, %v1346_v4  ;;  %v424_v50 = vmul.f32 %v413_v41, %v1343_v2  ;;  %v428_v52 = vmul.f32 %v411_v39, %v1340_v1  ;;  %s1399_s21 = spop %719 }
  0xb8   : > { %v426_v51 = vmul.f32 %v416_v44, %v1346_v4  ;;  %v429_v54 = vmul.f32 %v414_v42, %v1343_v2  ;;  %v431_v55 = vmul.f32 %v417_v45, %v1346_v4  ;;  %v433_v56 = vmul.f32 %v409_v37, %v1354_v17  ;;  %s245_s11 = smul.f32 %s1399_s21, %s1242_s22 }
  0xb9   : > { %v420_v53 = vadd.f32 %v419_v47, %v418_v46  ;;  %v425_v57 = vadd.f32 %v424_v50, %v423_v48  ;;  %v434_v58 = vmul.f32 %v412_v40, %v1357_v18  ;;  %v436_v59 = vmul.f32 %v415_v43, %v1361_v33  ;;  %s249_s3 = smul.f32 %s1399_s21, %s1268_s30 }
  0xba   : > { %v438_v60 = vmul.f32 %v410_v38, %v1354_v17  ;;  %v430_v62 = vadd.f32 %v429_v54, %v428_v52  ;;  %v439_v63 = vmul.f32 %v413_v41, %v1357_v18  ;;  %v441_v0 = vmul.f32 %v416_v44, %v1361_v33  ;;  %s1412_s12 = smul.f32 %s1399_s21, %s1553_s17 }
  0xbb   : > { %v422_v61 = vadd.f32 %v421_v49, %v420_v53  ;;  %v427_v3 = vadd.f32 %v426_v51, %v425_v57  ;;  %v435_v5 = vadd.f32 %v434_v58, %v433_v56  ;;  %v443_v6 = vmul.f32 %v411_v39, %v1354_v17  ;;  %s259_s7 = smul.f32 %s1399_s21, %s1280_s13 }
  0xbc   : > { %v444_v7 = vmul.f32 %v414_v42, %v1357_v18  ;;  %v432_v9 = vadd.f32 %v431_v55, %v430_v62  ;;  %v440_v10 = vadd.f32 %v439_v63, %v438_v60  ;;  %v446_v11 = vmul.f32 %v417_v45, %v1361_v33  ;;  %s264_s30 = smul.f32 %s1399_s21, %s1255_s19 }
  0xbd   : > { %v448_v12 = vmul.f32 %v409_v37, %v1364_v34  ;;  %v437_v13 = vadd.f32 %v436_v59, %v435_v5  ;;  %v449_v15 = vmul.f32 %v412_v40, %v1367_v35  ;;  %v451_v16 = vmul.f32 %v415_v43, %v1370_v36  ;;  %s268_s4 = smul.f32 %s1399_s21, %s1294_s2  ;;  %v292_v5 = vld [vmem:[%s1158_s23] sm:$0xff] }
  0xbe   : > { %v445_v14 = vadd.f32 %v444_v7, %v443_v6  ;;  %v442_v19 = vadd.f32 %v441_v0, %v440_v10  ;;  %v453_v20 = vmul.f32 %v410_v38, %v1364_v34  ;;  %v454_v21 = vmul.f32 %v413_v41, %v1367_v35  ;;  %v677_v6 = vld [vmem:[%s1158_s23 + $0x8] sm:$0xff]  ;;  %s253_s19 = smul.f32 %s1399_s21, %s1274_s9  ;;  %s184_s23 = sadd.s32 7, %s1307_s10 }
  0xbf   : > { %v456_v22 = vmul.f32 %v416_v44, %v1370_v36  ;;  %v450_v24 = vadd.f32 %v449_v15, %v448_v12  ;;  %v458_v25 = vmul.f32 %v411_v39, %v1364_v34  ;;  %v459_v26 = vmul.f32 %v414_v42, %v1367_v35  ;;  %s263_s24 = smul.f32 %s1399_s21, %s1286_s1  ;;  %s176_s1 = sadd.s32 3, %s1307_s10 }
  0xc0   : > { %v447_v23 = vadd.f32 %v446_v11, %v445_v14  ;;  %v455_v27 = vadd.f32 %v454_v21, %v453_v20  ;;  %v461_v28 = vmul.f32 %v417_v45, %v1370_v36  ;;  %v463_v29 = vmul.f32 %v422_v61, %v422_v61  ;;  %s269_s22 = smul.f32 %s1399_s21, %s1224_s14  ;;  %s192_s14 = sadd.s32 11, %s1307_s10 }
  0xc1   : > { %v464_v30 = vmul.f32 %v427_v3, %v427_v3  ;;  %v452_v31 = vadd.f32 %v451_v16, %v450_v24  ;;  %v460_v32 = vadd.f32 %v459_v26, %v458_v25  ;;  %v466_v37 = vmul.f32 %v432_v9, %v432_v9  ;;  %s177_s9 = sld [smem:[#allocation3 + %s176_s1]]  ;;  %s991_s21 = smov [#allocation8]  }
  0xc2   : > { %v470_v38 = vmul.f32 %v437_v13, %v422_v61  ;;  %v457_v40 = vadd.f32 %v456_v22, %v455_v27  ;;  %v471_v39 = vmul.f32 %v442_v19, %v427_v3  ;;  %v473_v43 = vmul.f32 %v447_v23, %v432_v9  ;;  %s185_s13 = sld [smem:[#allocation3 + %s184_s23]] }
  0xc3   : > { %v465_v41 = vadd.f32 %v464_v30, %v463_v29  ;;  %v462_v42 = vadd.f32 %v461_v28, %v460_v32  ;;  %v477_v44 = vmul.f32 %v452_v31, %v422_v61  ;;  %v484_v45 = vmul.f32 %v437_v13, %v437_v13  ;;  %s193_s2 = sld [smem:[#allocation3 + %s192_s14]] }
  0xc4   : > { %v485_v46 = vmul.f32 %v442_v19, %v442_v19  ;;  %v472_v48 = vadd.f32 %v471_v39, %v470_v38  ;;  %v478_v49 = vmul.f32 %v457_v40, %v427_v3  ;;  %v487_v50 = vmul.f32 %v447_v23, %v447_v23 }
  0xc5   : > { %v467_v47 = vadd.f32 %v466_v37, %v465_v41  ;;  %v480_v51 = vmul.f32 %v462_v42, %v432_v9  ;;  %v491_v53 = vmul.f32 %v452_v31, %v437_v13  ;;  %v492_v54 = vmul.f32 %v457_v40, %v442_v19 }
  0xc6   : > { %v486_v52 = vadd.f32 %v485_v46, %v484_v45  ;;  %v474_v55 = vadd.f32 %v473_v43, %v472_v48  ;;  %v479_v56 = vadd.f32 %v478_v49, %v477_v44  ;;  %v494_v57 = vmul.f32 %v462_v42, %v447_v23 }
  0xc7   : > { %696 = vst [vmem:[%s1219_s18 + $0x18] sm:$0xff] %v467_v47  ;;  %v498_v58 = vmul.f32 %v452_v31, %v452_v31  ;;  %v493_v60 = vadd.f32 %v492_v54, %v491_v53  ;;  %v499_v61 = vmul.f32 %v457_v40, %v457_v40  ;;  %v501_v62 = vmul.f32 %v462_v42, %v462_v42 }
  0xc8   : > { %v488_v59 = vadd.f32 %v487_v50, %v486_v52  ;;  %697 = vst [vmem:[%s1219_s18 + $0x20] sm:$0xff] %v474_v55  ;;  %v481_v63 = vadd.f32 %v480_v51, %v479_v56  ;;  %v279_v0 = vstv %s245_s11  ;;  %v280_v3 = vstv %s249_s3  ;;  %s887_s11 = sshll.u32 %s991_s21, 4  ;;  %s888_s11 = int_to_ptr.vmem [resolvable:$false] %s887_s11 }
  0xc9   : > { %v495_v7 = vadd.f32 %v494_v57, %v493_v60  ;;  %v500_v9 = vadd.f32 %v499_v61, %v498_v58  ;;  %v282_v10 = vstv %s1412_s12  ;;  %v283_v11 = vstv %s259_s7  ;;  %s889_s3 = scalar_lea.vmem %s888_s11, 4864  ;;  %p890_p6 = scmp.lt.s32.totalorder %s1459_s8, %s888_s11 }
  0xca   : > { %699 = vst [vmem:[%s1219_s18 + $0x30] sm:$0xff] %v488_v59  ;;  %698 = vst [vmem:[%s1219_s18 + $0x28] sm:$0xff] %v481_v63  ;;  %v285_v12 = vstv %s264_s30  ;;  %v286_v13 = vstv %s268_s4  ;;  %v505_v15 = vmul.f32 %v292_v5, %v279_v0  ;;  %v506_v16 = vmul.f32 %v677_v6, %v280_v3  ;;  %p891_p7 = scmp.lt.s32.totalorder %s889_s3, %s883_s16 }
  0xcb   : > { %700 = vst [vmem:[%s1219_s18 + $0x38] sm:$0xff] %v495_v7  ;;  %v502_v14 = vadd.f32 %v501_v62, %v500_v9  ;;  %v509_v19 = vmul.f32 %v292_v5, %v282_v10  ;;  %v510_v20 = vmul.f32 %v677_v6, %v283_v11  ;;  %v513_v21 = vmul.f32 %v292_v5, %v285_v12 }
  0xcc   : > { %v514_v22 = vmul.f32 %v677_v6, %v286_v13  ;;  %v507_v23 = vadd.f32 %v506_v16, %v505_v15  ;;  %v281_v24 = vstv %s253_s19  ;;  %v284_v27 = vstv %s263_s24  ;;  %p892_p9 = por %p891_p7, %p890_p6 }
  0xcd   : > { %701 = vst [vmem:[%s1219_s18 + $0x40] sm:$0xff] %v502_v14  ;;  %v511_v25 = vadd.f32 %v510_v20, %v509_v19  ;;  %v287_v28 = vstv %s269_s22  ;;  %v290_v51 = vstv %s193_s2 }
  0xce   : > { %v515_v26 = vadd.f32 %v514_v22, %v513_v21  ;;  %v508_v29 = vadd.f32 %v507_v23, %v281_v24  ;;  %p893_p11 = pnand %p892_p9, %p886_p8 }
  0xcf   : > { %v512_v30 = vadd.f32 %v511_v25, %v284_v27 }
  0xd0   : > { %v516_v31 = vadd.f32 %v515_v26, %v287_v28  ;;  %v517_v32 = vmul.f32 %v508_v29, %v508_v29  ;;  %v524_v37 = vmul.f32 %v508_v29, %v1340_v1  ;;  %v532_v38 = vmul.f32 %v508_v29, %v1354_v17 }
  0xd1   : > { %v541_v40 = vmul.f32 %v508_v29, %v1364_v34  ;;  %v518_v41 = vmul.f32 %v512_v30, %v512_v30  ;;  %v525_v39 = vmul.f32 %v512_v30, %v1343_v2  ;;  %v533_v43 = vmul.f32 %v512_v30, %v1357_v18 }
  0xd2   : > { %v542_v42 = vmul.f32 %v512_v30, %v1367_v35  ;;  %v520_v45 = vmul.f32 %v516_v31, %v516_v31  ;;  %v527_v47 = vmul.f32 %v516_v31, %v1346_v4  ;;  %v535_v17 = vmul.f32 %v516_v31, %v1361_v33 }
  0xd3   : > { %v519_v44 = vadd.f32 %v518_v41, %v517_v32  ;;  %v526_v46 = vadd.f32 %v525_v39, %v524_v37  ;;  %v534_v1 = vadd.f32 %v533_v43, %v532_v38  ;;  %v544_v48 = vmul.f32 %v516_v31, %v1370_v36 }
  0xd4   : > { %v543_v34 = vadd.f32 %v542_v42, %v541_v40  ;;  %v288_v35 = vstv %s177_s9  ;;  %v289_v36 = vstv %s185_s13 }
  0xd5   : > { %v521_v2 = vadd.f32 %v520_v45, %v519_v44  ;;  %v528_v49 = vadd.f32 %v527_v47, %v526_v46  ;;  %v536_v18 = vadd.f32 %v535_v17, %v534_v1 }
  0xd6   : > { %v545_v50 = vadd.f32 %v544_v48, %v543_v34 }
  0xd7   : > { %829 = vrsqrt.f32 %v521_v2 }
  0xe1   : > { %v830_v4 = vpop.eup %829 }
  0xe2   : > { %v523_v33 = vmul.f32 %v830_v4, %v1350_v8 }
  0xe4   : > { %v529_v52 = vmul.f32 %v528_v49, %v523_v33  ;;  %v537_v53 = vmul.f32 %v536_v18, %v523_v33  ;;  %v546_v54 = vmul.f32 %v545_v50, %v523_v33 }
  0xe6   : > { %v530_v8 = vadd.f32 %v529_v52, %v288_v35  ;;  %v538_v55 = vadd.f32 %v537_v53, %v289_v36  ;;  %v547_v56 = vadd.f32 %v546_v54, %v290_v51 }
  0xe8   : > { %531 = vst [vmem:[%s1219_s18] sm:$0xff] %v530_v8  ;;  %702 = vst [vmem:[%s1219_s18 + $0x8] sm:$0xff] %v538_v55 }
  0xe9   : > { %703 = vst [vmem:[%s1219_s18 + $0x10] sm:$0xff] %v547_v56 }
  0xea   : > { %896 = shalt.err (!%p893_p11)
}
  0xeb   : > { %s897_s18 = scalar_lea.hbm %s1457_s28, 2432  ;;  %s901_s7 = scalar_lea.hbm %s1556_s6, 19456 }
  0xec   : > { %p898_p13 = scmp.ne.s32.totalorder %s1457_s28, %s897_s18  ;;  %p902_p10 = scmp.lt.u32.totalorder %s1457_s28, %s1556_s6 }
  0xed   : > { %p903_p12 = scmp.lt.u32.totalorder %s901_s7, %s897_s18  ;;  %p905_p1 = scmp.lt.u32.totalorder %s897_s18, %s1457_s28 }
  0xee   : > { %p899_p0 = pnand %p898_p13, %p1557_p4 }
  0xef   : > { %p904_p3 = por %p903_p12, %p902_p10 }
  0xf0   : > { %p900_p2 = pneg %p899_p0 }
  0xf1   : > { %p906_p5 = por %p905_p1, %p904_p3 }
  0xf3   : > { %p907_p8 = pnand %p906_p5, %p900_p2 }
  0xf5   : > { %910 = shalt.err (!%p907_p8)
}
  0xf6   : > { %s992_s19 = smov 128   ;;  %s993_s24 = smov 1024  }
  0xf7   : > { %s994_s22 = smov 8  }
  0xf8   : > { %723 = dma.vmem_to_hbm [thread:$0]  (%p1557_p4), %s1459_s8, 2432, %s1457_s28, %s563_s0, %s992_s19, %s993_s24, %s994_s22  }
  0xf9 PF: > { %s1558_s1 = sld [smem:[#allocation17_spill]]  ;;  %s1559_s23 = sld [smem:[#allocation12_spill]] }
  0xfa   : > { %s1560_s14 = sld [smem:[#allocation21_spill]] }
  0xff   : > { %p734_p6 = scmp.ge.s32.totalorder %s1558_s1, 2  ;;  %s592_s9 = sand.u32 1, %s1559_s23  }
 0x100   : > { %p1561_p7 = scmp.ne.s32.totalorder %s1560_s14, 0  ;;  %s593_s13 = scalar_lea.sflag [#allocation7], %s592_s9 }
 0x102   : > { %p730_p9 = pnand %p734_p6, %p1561_p7 }
 0x104   : > { %950 = dma.done.wait (!%p730_p9), %s593_s13, 2432  }
 0x105   : > { %952 = vsyncadd (!%p730_p9), %s593_s13, 4294964864  ;;  %s27_s5 = sadd.s32 1, %s1558_s1   ;;  %s1562_s0 = sld [smem:[#allocation13_spill]] }
 0x106   : > { %p24_p11 = scmp.ge.s32.totalorder %s27_s5, 10   ;;  %s1563_s1 = sld [smem:[#allocation14_spill]] }
 0x107   : > { %s1564_s27 = sld [smem:[#allocation22_spill]]  ;;  %s1565_s28 = sld [smem:[#allocation15_spill]] }
 0x108   : > { %s1566_s29 = sld [smem:[#allocation16_spill]]  ;;  %s1567_s30 = sld [smem:[#allocation18_spill]] }
 0x109   : > { %s1568_s4 = sld [smem:[#allocation19_spill]]  ;;  %26 = sbr.rel (!%p24_p11) target bundleno = 30 (0x1e), region = 99 }
 0x110   :  { %598 = vsyncpa [#allocation6], 1 }
 0x111   :  { %600 = vsyncpa [#allocation6 + $0x1], 1 }
 0x112   :  { %601 = vsyncpa [#allocation7], 1 }
 0x113   :  { %603 = vsyncpa [#allocation7 + $0x1], 1 }

</bundles_post_ra>
